<compile_context>
chip_gen: v7x
topology: tpu7x:2x2x1
jax: 0.10.0
libtpu: 0.0.40
codegen_flags: <defaults>
</compile_context>

<pallas_src>
import functools

import jax
import jax.numpy as jnp
from jax.experimental import pallas as pl
from jax.experimental.pallas import tpu as pltpu


def _encoder_lstm_kernel(*refs, hidden_dim, seq_len, batch, apply_mask):
    if apply_mask:
        (x_ref, mask_ref, wih_ref, whh_ref, b_ref,
         out_ref, h_out_ref, c_out_ref, pg_sc, o_sc) = refs
    else:
        (x_ref, wih_ref, whh_ref, b_ref,
         out_ref, h_out_ref, c_out_ref, pg_sc, o_sc) = refs
        mask_ref = None

    H, T, B = hidden_dim, seq_len, batch

    wih = wih_ref[...]            # (E, 4H)   hoisted loads (once per call)
    whh = whh_ref[...]            # (H, 4H)
    bias = b_ref[...]             # (1, 4H)

    # ---- hoisted, non-recurrent input projection for ALL timesteps ----------
    # one (T, E) x (E, 4H) MXU matmul per batch row, stored time-major so the
    # recurrence can index the leading axis cheaply.  (B is small & static.)
    for b in range(B):
        xb = x_ref[b]                                    # (T, E)
        if apply_mask:
            xb = xb * mask_ref[b]                        # keep-scale already folded into mask
        pg_sc[:, b, :] = (
            jnp.dot(xb, wih, preferred_element_type=jnp.float32) + bias)

    # ---- sequential recurrence: only h @ W_hh^T per step --------------------
    def step(t, carry):
        h, c = carry
        gates = pg_sc[t] + jnp.dot(h, whh, preferred_element_type=jnp.float32)  # (B, 4H)
        i_g = jax.nn.sigmoid(gates[:, 0 * H:1 * H])
        f_g = jax.nn.sigmoid(gates[:, 1 * H:2 * H])
        g_g = jnp.tanh(gates[:, 2 * H:3 * H])
        o_g = jax.nn.sigmoid(gates[:, 3 * H:4 * H])
        c_new = f_g * c + i_g * g_g
        h_new = o_g * jnp.tanh(c_new)
        o_sc[t] = h_new
        return (h_new, c_new)

    h0 = jnp.zeros((B, H), jnp.float32)
    c0 = jnp.zeros((B, H), jnp.float32)
    h_last, c_last = jax.lax.fori_loop(0, T, step, (h0, c0), unroll=True)

    # ---- writeback: outputs batch-first, final state written once -----------
    for b in range(B):
        out_ref[b] = o_sc[:, b, :].astype(out_ref.dtype)   # (T, H)
    h_out_ref[...] = h_last.astype(h_out_ref.dtype)
    c_out_ref[...] = c_last.astype(c_out_ref.dtype)


def encoder_forward(token_ids, params, *, dropout_p, dropout_key=None, training=True):
    """token_ids: (B, T) int32.  Returns (outputs (B,T,H), hidden (1,B,H), cell (1,B,H))."""
    emb_table = params["embedding"]          # (V, E)
    w_ih = params["w_ih"]                    # (4H, E)  PyTorch layout
    w_hh = params["w_hh"]                    # (4H, H)
    bias = params["b_ih"] + params["b_hh"]   # (4H,)

    B, T = token_ids.shape
    E = emb_table.shape[1]
    H = w_hh.shape[1]

    # glue: embedding gather (data-dependent row gather, done as XLA op)
    emb = jnp.take(emb_table, token_ids, axis=0).astype(jnp.float32)   # (B, T, E)

    use_mask = bool(training) and dropout_p > 0.0
    if use_mask:
        keep = 1.0 - float(dropout_p)
        bern = jax.random.bernoulli(dropout_key, keep, emb.shape)
        # fold the 1/keep inverted-dropout scaling into the mask (one in-kernel mul)
        scaled_mask = jnp.where(bern, 1.0 / keep, 0.0).astype(emb.dtype)
        kernel_inputs = (emb, scaled_mask)
    else:
        kernel_inputs = (emb,)               # maskless variant: no mask DMA at inference

    wih_t = w_ih.T                           # (E, 4H)
    whh_t = w_hh.T                           # (H, 4H)
    b2d = bias.reshape(1, 4 * H)

    kernel = functools.partial(
        _encoder_lstm_kernel,
        hidden_dim=H, seq_len=T, batch=B, apply_mask=use_mask)

    in_specs = [pl.BlockSpec((B, T, E), lambda i: (0, 0, 0))]
    if use_mask:
        in_specs.append(pl.BlockSpec((B, T, E), lambda i: (0, 0, 0)))
    in_specs += [
        pl.BlockSpec((E, 4 * H), lambda i: (0, 0)),
        pl.BlockSpec((H, 4 * H), lambda i: (0, 0)),
        pl.BlockSpec((1, 4 * H), lambda i: (0, 0)),
    ]

    outputs, h_last, c_last = pl.pallas_call(
        kernel,
        out_shape=(
            jax.ShapeDtypeStruct((B, T, H), jnp.float32),
            jax.ShapeDtypeStruct((B, H), jnp.float32),
            jax.ShapeDtypeStruct((B, H), jnp.float32),
        ),
        grid=(1,),                            # single invocation: recurrence lives in-kernel
        in_specs=in_specs,
        out_specs=(
            pl.BlockSpec((B, T, H), lambda i: (0, 0, 0)),
            pl.BlockSpec((B, H), lambda i: (0, 0)),
            pl.BlockSpec((B, H), lambda i: (0, 0)),
        ),
        scratch_shapes=[
            pltpu.VMEM((T, B, 4 * H), jnp.float32),   # time-major pre-gates (hoisted x@W_ih + b)
            pltpu.VMEM((T, B, H), jnp.float32),       # time-major output staging
        ],
        compiler_params=pltpu.CompilerParams(
            dimension_semantics=("arbitrary",)),
    )(*kernel_inputs, wih_t, whh_t, b2d)

    hidden = h_last[None]                     # (1, B, H)
    cell = c_last[None]                       # (1, B, H)
    # TODO(synk): bidirectional=True path (second reversed LSTM + reshape_vec of hidden/cell) not implemented.
    return outputs, hidden, cell


def _ref_forward(token_ids, params, scaled_mask):
    """Pure-JAX reference (same pre-scaled dropout mask) for correctness check."""
    emb = jnp.take(params["embedding"], token_ids, axis=0)
    x = emb * scaled_mask
    w_ih, w_hh = params["w_ih"], params["w_hh"]
    b = params["b_ih"] + params["b_hh"]
    B = x.shape[0]
    H = w_hh.shape[1]

    def step(carry, xt):                      # xt: (B, E)
        h, c = carry
        gates = xt @ w_ih.T + h @ w_hh.T + b
        i = jax.nn.sigmoid(gates[:, :H])
        f = jax.nn.sigmoid(gates[:, H:2 * H])
        g = jnp.tanh(gates[:, 2 * H:3 * H])
        o = jax.nn.sigmoid(gates[:, 3 * H:])
        c = f * c + i * g
        h = o * jnp.tanh(c)
        return (h, c), h

    x_tm = jnp.transpose(x, (1, 0, 2))
    (h, c), outs = jax.lax.scan(step, (jnp.zeros((B, H)), jnp.zeros((B, H))), x_tm)
    return jnp.transpose(outs, (1, 0, 2)), h[None], c[None]


if __name__ == "__main__":
    # module hyper-params (small, consistent with Encoder.__init__)
    vocab_size, embed_dim, hidden_dim, p = 50, 32, 32, 0.2
    B, T = 2, 8

    key = jax.random.PRNGKey(0)
    k_emb, k_wih, k_whh, k_bih, k_bhh, k_ids, k_drop = jax.random.split(key, 7)
    scale = 1.0 / jnp.sqrt(hidden_dim)
    params = {
        "embedding": jax.random.normal(k_emb, (vocab_size, embed_dim), jnp.float32),
        "w_ih": jax.random.uniform(k_wih, (4 * hidden_dim, embed_dim), jnp.float32, -scale, scale),
        "w_hh": jax.random.uniform(k_whh, (4 * hidden_dim, hidden_dim), jnp.float32, -scale, scale),
        "b_ih": jax.random.uniform(k_bih, (4 * hidden_dim,), jnp.float32, -scale, scale),
        "b_hh": jax.random.uniform(k_bhh, (4 * hidden_dim,), jnp.float32, -scale, scale),
    }
    token_ids = jax.random.randint(k_ids, (B, T), 0, vocab_size, jnp.int32)

    # --- training path (dropout active, masked kernel variant) ---
    outputs, hidden, cell = encoder_forward(
        token_ids, params, dropout_p=p, dropout_key=k_drop, training=True)
    jax.block_until_ready((outputs, hidden, cell))

    keep = 1.0 - p
    bern = jax.random.bernoulli(k_drop, keep, (B, T, embed_dim))
    scaled_mask = jnp.where(bern, 1.0 / keep, 0.0).astype(jnp.float32)
    ref_out, ref_h, ref_c = _ref_forward(token_ids, params, scaled_mask)
    assert jnp.allclose(outputs, ref_out, atol=1e-3, rtol=1e-3)
    assert jnp.allclose(hidden, ref_h, atol=1e-3, rtol=1e-3)
    assert jnp.allclose(cell, ref_c, atol=1e-3, rtol=1e-3)
    assert outputs.shape == (B, T, hidden_dim)
    assert hidden.shape == (1, B, hidden_dim) and cell.shape == (1, B, hidden_dim)

    # --- eval path (no dropout, maskless kernel variant) ---
    out_e, h_e, c_e = encoder_forward(
        token_ids, params, dropout_p=p, dropout_key=None, training=False)
    jax.block_until_ready((out_e, h_e, c_e))
    ones_mask = jnp.ones((B, T, embed_dim), jnp.float32)
    ref_out_e, ref_h_e, ref_c_e = _ref_forward(token_ids, params, ones_mask)
    assert jnp.allclose(out_e, ref_out_e, atol=1e-3, rtol=1e-3)
    assert jnp.allclose(h_e, ref_h_e, atol=1e-3, rtol=1e-3)
    assert jnp.allclose(c_e, ref_c_e, atol=1e-3, rtol=1e-3)

    print("KERNEL_OK")
</pallas_src>

<mosaic_0001>
module attributes {stable_mosaic.version = 11 : i64} {
  func.func @_encoder_lstm_kernel(%arg0: i32, %arg1: memref<2x8x32xf32, #tpu.memory_space<vmem>>, %arg2: memref<2x8x32xf32, #tpu.memory_space<vmem>>, %arg3: memref<32x128xf32, #tpu.memory_space<vmem>>, %arg4: memref<32x128xf32, #tpu.memory_space<vmem>>, %arg5: memref<1x128xf32, #tpu.memory_space<vmem>>, %arg6: memref<2x8x32xf32, #tpu.memory_space<vmem>>, %arg7: memref<2x32xf32, #tpu.memory_space<vmem>>, %arg8: memref<2x32xf32, #tpu.memory_space<vmem>>, %arg9: memref<8x2x128xf32, #tpu.memory_space<vmem>>, %arg10: memref<8x2x32xf32, #tpu.memory_space<vmem>>) attributes {dimension_semantics = [#tpu.dimension_semantics<arbitrary>], iteration_bounds = array<i64: 1>, scalar_prefetch = 0 : i64, scratch_operands = 2 : i64, tpu.core_type = #tpu.core_type<tc>, window_params = [{pipeline_mode = #tpu.pipeline_mode<synchronous>, transform_indices = @transform_0, window_bounds = array<i64: 2, 8, 32>}, {pipeline_mode = #tpu.pipeline_mode<synchronous>, transform_indices = @transform_1, window_bounds = array<i64: 2, 8, 32>}, {pipeline_mode = #tpu.pipeline_mode<synchronous>, transform_indices = @transform_2, window_bounds = array<i64: 32, 128>}, {pipeline_mode = #tpu.pipeline_mode<synchronous>, transform_indices = @transform_3, window_bounds = array<i64: 32, 128>}, {pipeline_mode = #tpu.pipeline_mode<synchronous>, transform_indices = @transform_4, window_bounds = array<i64: 1, 128>}, {pipeline_mode = #tpu.pipeline_mode<synchronous>, transform_indices = @transform_5, window_bounds = array<i64: 2, 8, 32>}, {pipeline_mode = #tpu.pipeline_mode<synchronous>, transform_indices = @transform_6, window_bounds = array<i64: 2, 32>}, {pipeline_mode = #tpu.pipeline_mode<synchronous>, transform_indices = @transform_7, window_bounds = array<i64: 2, 32>}]} {
    %c0 = arith.constant 0 : index
    %c0_0 = arith.constant 0 : index
    %0 = vector.load %arg3[%c0, %c0_0] : memref<32x128xf32, #tpu.memory_space<vmem>>, vector<32x128xf32>
    %c0_1 = arith.constant 0 : index
    %c0_2 = arith.constant 0 : index
    %1 = vector.load %arg4[%c0_1, %c0_2] : memref<32x128xf32, #tpu.memory_space<vmem>>, vector<32x128xf32>
    %c0_3 = arith.constant 0 : index
    %c0_4 = arith.constant 0 : index
    %2 = vector.load %arg5[%c0_3, %c0_4] : memref<1x128xf32, #tpu.memory_space<vmem>>, vector<1x128xf32>
    %c0_5 = arith.constant 0 : index
    %c0_6 = arith.constant 0 : index
    %c0_7 = arith.constant 0 : index
    %3 = vector.load %arg1[%c0_5, %c0_6, %c0_7] : memref<2x8x32xf32, #tpu.memory_space<vmem>>, vector<1x8x32xf32>
    %4 = vector.shape_cast %3 : vector<1x8x32xf32> to vector<8x32xf32>
    %c0_8 = arith.constant 0 : index
    %c0_9 = arith.constant 0 : index
    %c0_10 = arith.constant 0 : index
    %5 = vector.load %arg2[%c0_8, %c0_9, %c0_10] : memref<2x8x32xf32, #tpu.memory_space<vmem>>, vector<1x8x32xf32>
    %6 = vector.shape_cast %5 : vector<1x8x32xf32> to vector<8x32xf32>
    %7 = arith.mulf %4, %6 : vector<8x32xf32>
    %cst = arith.constant dense<0.000000e+00> : vector<8x128xf32>
    %8 = tpu.matmul %7, %0, %cst {dimension_numbers = #tpu.dot_dimension_numbers<[1], [0], [0], [1], [0, 0, 1, 1], [], []>} : vector<8x32xf32>, vector<32x128xf32>, vector<8x128xf32> -> vector<8x128xf32>
    %9 = vector.broadcast %2 : vector<1x128xf32> to vector<8x128xf32>
    %10 = arith.addf %8, %9 : vector<8x128xf32>
    %c0_11 = arith.constant 0 : index
    %c0_12 = arith.constant 0 : index
    %c0_13 = arith.constant 0 : index
    %11 = vector.load %arg9[%c0_11, %c0_12, %c0_13] : memref<8x2x128xf32, #tpu.memory_space<vmem>>, vector<8x1x128xf32>
    %12 = vector.shape_cast %11 : vector<8x1x128xf32> to vector<8x128xf32>
    %13 = vector.shape_cast %10 : vector<8x128xf32> to vector<8x1x128xf32>
    tpu.vector_store %arg9[%c0_11, %c0_12, %c0_13], %13 {strides = array<i32>} : memref<8x2x128xf32, #tpu.memory_space<vmem>>, vector<8x1x128xf32>,
    %c1 = arith.constant 1 : index
    %c0_14 = arith.constant 0 : index
    %c0_15 = arith.constant 0 : index
    %14 = vector.load %arg1[%c1, %c0_14, %c0_15] : memref<2x8x32xf32, #tpu.memory_space<vmem>>, vector<1x8x32xf32>
    %15 = vector.shape_cast %14 : vector<1x8x32xf32> to vector<8x32xf32>
    %c1_16 = arith.constant 1 : index
    %c0_17 = arith.constant 0 : index
    %c0_18 = arith.constant 0 : index
    %16 = vector.load %arg2[%c1_16, %c0_17, %c0_18] : memref<2x8x32xf32, #tpu.memory_space<vmem>>, vector<1x8x32xf32>
    %17 = vector.shape_cast %16 : vector<1x8x32xf32> to vector<8x32xf32>
    %18 = arith.mulf %15, %17 : vector<8x32xf32>
    %cst_19 = arith.constant dense<0.000000e+00> : vector<8x128xf32>
    %19 = tpu.matmul %18, %0, %cst_19 {dimension_numbers = #tpu.dot_dimension_numbers<[1], [0], [0], [1], [0, 0, 1, 1], [], []>} : vector<8x32xf32>, vector<32x128xf32>, vector<8x128xf32> -> vector<8x128xf32>
    %20 = vector.broadcast %2 : vector<1x128xf32> to vector<8x128xf32>
    %21 = arith.addf %19, %20 : vector<8x128xf32>
    %c0_20 = arith.constant 0 : index
    %c1_21 = arith.constant 1 : index
    %c0_22 = arith.constant 0 : index
    %22 = vector.load %arg9[%c0_20, %c1_21, %c0_22] : memref<8x2x128xf32, #tpu.memory_space<vmem>>, vector<8x1x128xf32>
    %23 = vector.shape_cast %22 : vector<8x1x128xf32> to vector<8x128xf32>
    %24 = vector.shape_cast %21 : vector<8x128xf32> to vector<8x1x128xf32>
    tpu.vector_store %arg9[%c0_20, %c1_21, %c0_22], %24 {strides = array<i32>} : memref<8x2x128xf32, #tpu.memory_space<vmem>>, vector<8x1x128xf32>,
    %cst_23 = arith.constant 0.000000e+00 : f32
    %25 = vector.broadcast %cst_23 : f32 to vector<2x32xf32>
    %cst_24 = arith.constant 0.000000e+00 : f32
    %26 = vector.broadcast %cst_24 : f32 to vector<2x32xf32>
    %c0_i32 = arith.constant 0 : i32
    %27 = arith.index_cast %c0_i32 : i32 to index
    %c0_25 = arith.constant 0 : index
    %c0_26 = arith.constant 0 : index
    %28 = vector.load %arg9[%27, %c0_25, %c0_26] : memref<8x2x128xf32, #tpu.memory_space<vmem>>, vector<1x2x128xf32>
    %29 = vector.shape_cast %28 : vector<1x2x128xf32> to vector<2x128xf32>
    %cst_27 = arith.constant dense<0.000000e+00> : vector<2x128xf32>
    %30 = tpu.matmul %25, %1, %cst_27 {dimension_numbers = #tpu.dot_dimension_numbers<[1], [0], [0], [1], [0, 0, 1, 1], [], []>} : vector<2x32xf32>, vector<32x128xf32>, vector<2x128xf32> -> vector<2x128xf32>
    %31 = arith.addf %29, %30 : vector<2x128xf32>
    %32 = vector.extract_strided_slice %31 {offsets = [0, 0], sizes = [2, 32], strides = [1, 1]} : vector<2x128xf32> to vector<2x32xf32>
    %33 = arith.negf %32 : vector<2x32xf32>
    %34 = math.exp %33 : vector<2x32xf32>
    %cst_28 = arith.constant 1.000000e+00 : f32
    %35 = vector.broadcast %cst_28 : f32 to vector<2x32xf32>
    %36 = arith.addf %35, %34 : vector<2x32xf32>
    %37 = arith.divf %35, %36 : vector<2x32xf32>
    %38 = vector.extract_strided_slice %31 {offsets = [0, 32], sizes = [2, 32], strides = [1, 1]} : vector<2x128xf32> to vector<2x32xf32>
    %39 = arith.negf %38 : vector<2x32xf32>
    %40 = math.exp %39 : vector<2x32xf32>
    %cst_29 = arith.constant 1.000000e+00 : f32
    %41 = vector.broadcast %cst_29 : f32 to vector<2x32xf32>
    %42 = arith.addf %41, %40 : vector<2x32xf32>
    %43 = arith.divf %41, %42 : vector<2x32xf32>
    %44 = vector.extract_strided_slice %31 {offsets = [0, 64], sizes = [2, 32], strides = [1, 1]} : vector<2x128xf32> to vector<2x32xf32>
    %45 = math.tanh %44 : vector<2x32xf32>
    %46 = vector.extract_strided_slice %31 {offsets = [0, 96], sizes = [2, 32], strides = [1, 1]} : vector<2x128xf32> to vector<2x32xf32>
    %47 = arith.negf %46 : vector<2x32xf32>
    %48 = math.exp %47 : vector<2x32xf32>
    %cst_30 = arith.constant 1.000000e+00 : f32
    %49 = vector.broadcast %cst_30 : f32 to vector<2x32xf32>
    %50 = arith.addf %49, %48 : vector<2x32xf32>
    %51 = arith.divf %49, %50 : vector<2x32xf32>
    %52 = arith.mulf %43, %26 : vector<2x32xf32>
    %53 = arith.mulf %37, %45 : vector<2x32xf32>
    %54 = arith.addf %52, %53 : vector<2x32xf32>
    %55 = math.tanh %54 : vector<2x32xf32>
    %56 = arith.mulf %51, %55 : vector<2x32xf32>
    %57 = arith.index_cast %c0_i32 : i32 to index
    %c0_31 = arith.constant 0 : index
    %c0_32 = arith.constant 0 : index
    %58 = vector.load %arg10[%57, %c0_31, %c0_32] : memref<8x2x32xf32, #tpu.memory_space<vmem>>, vector<1x2x32xf32>
    %59 = vector.shape_cast %58 : vector<1x2x32xf32> to vector<2x32xf32>
    %60 = vector.shape_cast %56 : vector<2x32xf32> to vector<1x2x32xf32>
    tpu.vector_store %arg10[%57, %c0_31, %c0_32], %60 {strides = array<i32>} : memref<8x2x32xf32, #tpu.memory_space<vmem>>, vector<1x2x32xf32>,
    %c1_i32 = arith.constant 1 : i32
    %61 = arith.index_cast %c1_i32 : i32 to index
    %c0_33 = arith.constant 0 : index
    %c0_34 = arith.constant 0 : index
    %62 = vector.load %arg9[%61, %c0_33, %c0_34] : memref<8x2x128xf32, #tpu.memory_space<vmem>>, vector<1x2x128xf32>
    %63 = vector.shape_cast %62 : vector<1x2x128xf32> to vector<2x128xf32>
    %cst_35 = arith.constant dense<0.000000e+00> : vector<2x128xf32>
    %64 = tpu.matmul %56, %1, %cst_35 {dimension_numbers = #tpu.dot_dimension_numbers<[1], [0], [0], [1], [0, 0, 1, 1], [], []>} : vector<2x32xf32>, vector<32x128xf32>, vector<2x128xf32> -> vector<2x128xf32>
    %65 = arith.addf %63, %64 : vector<2x128xf32>
    %66 = vector.extract_strided_slice %65 {offsets = [0, 0], sizes = [2, 32], strides = [1, 1]} : vector<2x128xf32> to vector<2x32xf32>
    %67 = arith.negf %66 : vector<2x32xf32>
    %68 = math.exp %67 : vector<2x32xf32>
    %cst_36 = arith.constant 1.000000e+00 : f32
    %69 = vector.broadcast %cst_36 : f32 to vector<2x32xf32>
    %70 = arith.addf %69, %68 : vector<2x32xf32>
    %71 = arith.divf %69, %70 : vector<2x32xf32>
    %72 = vector.extract_strided_slice %65 {offsets = [0, 32], sizes = [2, 32], strides = [1, 1]} : vector<2x128xf32> to vector<2x32xf32>
    %73 = arith.negf %72 : vector<2x32xf32>
    %74 = math.exp %73 : vector<2x32xf32>
    %cst_37 = arith.constant 1.000000e+00 : f32
    %75 = vector.broadcast %cst_37 : f32 to vector<2x32xf32>
    %76 = arith.addf %75, %74 : vector<2x32xf32>
    %77 = arith.divf %75, %76 : vector<2x32xf32>
    %78 = vector.extract_strided_slice %65 {offsets = [0, 64], sizes = [2, 32], strides = [1, 1]} : vector<2x128xf32> to vector<2x32xf32>
    %79 = math.tanh %78 : vector<2x32xf32>
    %80 = vector.extract_strided_slice %65 {offsets = [0, 96], sizes = [2, 32], strides = [1, 1]} : vector<2x128xf32> to vector<2x32xf32>
    %81 = arith.negf %80 : vector<2x32xf32>
    %82 = math.exp %81 : vector<2x32xf32>
    %cst_38 = arith.constant 1.000000e+00 : f32
    %83 = vector.broadcast %cst_38 : f32 to vector<2x32xf32>
    %84 = arith.addf %83, %82 : vector<2x32xf32>
    %85 = arith.divf %83, %84 : vector<2x32xf32>
    %86 = arith.mulf %77, %54 : vector<2x32xf32>
    %87 = arith.mulf %71, %79 : vector<2x32xf32>
    %88 = arith.addf %86, %87 : vector<2x32xf32>
    %89 = math.tanh %88 : vector<2x32xf32>
    %90 = arith.mulf %85, %89 : vector<2x32xf32>
    %91 = arith.index_cast %c1_i32 : i32 to index
    %c0_39 = arith.constant 0 : index
    %c0_40 = arith.constant 0 : index
    %92 = vector.load %arg10[%91, %c0_39, %c0_40] : memref<8x2x32xf32, #tpu.memory_space<vmem>>, vector<1x2x32xf32>
    %93 = vector.shape_cast %92 : vector<1x2x32xf32> to vector<2x32xf32>
    %94 = vector.shape_cast %90 : vector<2x32xf32> to vector<1x2x32xf32>
    tpu.vector_store %arg10[%91, %c0_39, %c0_40], %94 {strides = array<i32>} : memref<8x2x32xf32, #tpu.memory_space<vmem>>, vector<1x2x32xf32>,
    %c2_i32 = arith.constant 2 : i32
    %95 = arith.index_cast %c2_i32 : i32 to index
    %c0_41 = arith.constant 0 : index
    %c0_42 = arith.constant 0 : index
    %96 = vector.load %arg9[%95, %c0_41, %c0_42] : memref<8x2x128xf32, #tpu.memory_space<vmem>>, vector<1x2x128xf32>
    %97 = vector.shape_cast %96 : vector<1x2x128xf32> to vector<2x128xf32>
    %cst_43 = arith.constant dense<0.000000e+00> : vector<2x128xf32>
    %98 = tpu.matmul %90, %1, %cst_43 {dimension_numbers = #tpu.dot_dimension_numbers<[1], [0], [0], [1], [0, 0, 1, 1], [], []>} : vector<2x32xf32>, vector<32x128xf32>, vector<2x128xf32> -> vector<2x128xf32>
    %99 = arith.addf %97, %98 : vector<2x128xf32>
    %100 = vector.extract_strided_slice %99 {offsets = [0, 0], sizes = [2, 32], strides = [1, 1]} : vector<2x128xf32> to vector<2x32xf32>
    %101 = arith.negf %100 : vector<2x32xf32>
    %102 = math.exp %101 : vector<2x32xf32>
    %cst_44 = arith.constant 1.000000e+00 : f32
    %103 = vector.broadcast %cst_44 : f32 to vector<2x32xf32>
    %104 = arith.addf %103, %102 : vector<2x32xf32>
    %105 = arith.divf %103, %104 : vector<2x32xf32>
    %106 = vector.extract_strided_slice %99 {offsets = [0, 32], sizes = [2, 32], strides = [1, 1]} : vector<2x128xf32> to vector<2x32xf32>
    %107 = arith.negf %106 : vector<2x32xf32>
    %108 = math.exp %107 : vector<2x32xf32>
    %cst_45 = arith.constant 1.000000e+00 : f32
    %109 = vector.broadcast %cst_45 : f32 to vector<2x32xf32>
    %110 = arith.addf %109, %108 : vector<2x32xf32>
    %111 = arith.divf %109, %110 : vector<2x32xf32>
    %112 = vector.extract_strided_slice %99 {offsets = [0, 64], sizes = [2, 32], strides = [1, 1]} : vector<2x128xf32> to vector<2x32xf32>
    %113 = math.tanh %112 : vector<2x32xf32>
    %114 = vector.extract_strided_slice %99 {offsets = [0, 96], sizes = [2, 32], strides = [1, 1]} : vector<2x128xf32> to vector<2x32xf32>
    %115 = arith.negf %114 : vector<2x32xf32>
    %116 = math.exp %115 : vector<2x32xf32>
    %cst_46 = arith.constant 1.000000e+00 : f32
    %117 = vector.broadcast %cst_46 : f32 to vector<2x32xf32>
    %118 = arith.addf %117, %116 : vector<2x32xf32>
    %119 = arith.divf %117, %118 : vector<2x32xf32>
    %120 = arith.mulf %111, %88 : vector<2x32xf32>
    %121 = arith.mulf %105, %113 : vector<2x32xf32>
    %122 = arith.addf %120, %121 : vector<2x32xf32>
    %123 = math.tanh %122 : vector<2x32xf32>
    %124 = arith.mulf %119, %123 : vector<2x32xf32>
    %125 = arith.index_cast %c2_i32 : i32 to index
    %c0_47 = arith.constant 0 : index
    %c0_48 = arith.constant 0 : index
    %126 = vector.load %arg10[%125, %c0_47, %c0_48] : memref<8x2x32xf32, #tpu.memory_space<vmem>>, vector<1x2x32xf32>
    %127 = vector.shape_cast %126 : vector<1x2x32xf32> to vector<2x32xf32>
    %128 = vector.shape_cast %124 : vector<2x32xf32> to vector<1x2x32xf32>
    tpu.vector_store %arg10[%125, %c0_47, %c0_48], %128 {strides = array<i32>} : memref<8x2x32xf32, #tpu.memory_space<vmem>>, vector<1x2x32xf32>,
    %c3_i32 = arith.constant 3 : i32
    %129 = arith.index_cast %c3_i32 : i32 to index
    %c0_49 = arith.constant 0 : index
    %c0_50 = arith.constant 0 : index
    %130 = vector.load %arg9[%129, %c0_49, %c0_50] : memref<8x2x128xf32, #tpu.memory_space<vmem>>, vector<1x2x128xf32>
    %131 = vector.shape_cast %130 : vector<1x2x128xf32> to vector<2x128xf32>
    %cst_51 = arith.constant dense<0.000000e+00> : vector<2x128xf32>
    %132 = tpu.matmul %124, %1, %cst_51 {dimension_numbers = #tpu.dot_dimension_numbers<[1], [0], [0], [1], [0, 0, 1, 1], [], []>} : vector<2x32xf32>, vector<32x128xf32>, vector<2x128xf32> -> vector<2x128xf32>
    %133 = arith.addf %131, %132 : vector<2x128xf32>
    %134 = vector.extract_strided_slice %133 {offsets = [0, 0], sizes = [2, 32], strides = [1, 1]} : vector<2x128xf32> to vector<2x32xf32>
    %135 = arith.negf %134 : vector<2x32xf32>
    %136 = math.exp %135 : vector<2x32xf32>
    %cst_52 = arith.constant 1.000000e+00 : f32
    %137 = vector.broadcast %cst_52 : f32 to vector<2x32xf32>
    %138 = arith.addf %137, %136 : vector<2x32xf32>
    %139 = arith.divf %137, %138 : vector<2x32xf32>
    %140 = vector.extract_strided_slice %133 {offsets = [0, 32], sizes = [2, 32], strides = [1, 1]} : vector<2x128xf32> to vector<2x32xf32>
    %141 = arith.negf %140 : vector<2x32xf32>
    %142 = math.exp %141 : vector<2x32xf32>
    %cst_53 = arith.constant 1.000000e+00 : f32
    %143 = vector.broadcast %cst_53 : f32 to vector<2x32xf32>
    %144 = arith.addf %143, %142 : vector<2x32xf32>
    %145 = arith.divf %143, %144 : vector<2x32xf32>
    %146 = vector.extract_strided_slice %133 {offsets = [0, 64], sizes = [2, 32], strides = [1, 1]} : vector<2x128xf32> to vector<2x32xf32>
    %147 = math.tanh %146 : vector<2x32xf32>
    %148 = vector.extract_strided_slice %133 {offsets = [0, 96], sizes = [2, 32], strides = [1, 1]} : vector<2x128xf32> to vector<2x32xf32>
    %149 = arith.negf %148 : vector<2x32xf32>
    %150 = math.exp %149 : vector<2x32xf32>
    %cst_54 = arith.constant 1.000000e+00 : f32
    %151 = vector.broadcast %cst_54 : f32 to vector<2x32xf32>
    %152 = arith.addf %151, %150 : vector<2x32xf32>
    %153 = arith.divf %151, %152 : vector<2x32xf32>
    %154 = arith.mulf %145, %122 : vector<2x32xf32>
    %155 = arith.mulf %139, %147 : vector<2x32xf32>
    %156 = arith.addf %154, %155 : vector<2x32xf32>
    %157 = math.tanh %156 : vector<2x32xf32>
    %158 = arith.mulf %153, %157 : vector<2x32xf32>
    %159 = arith.index_cast %c3_i32 : i32 to index
    %c0_55 = arith.constant 0 : index
    %c0_56 = arith.constant 0 : index
    %160 = vector.load %arg10[%159, %c0_55, %c0_56] : memref<8x2x32xf32, #tpu.memory_space<vmem>>, vector<1x2x32xf32>
    %161 = vector.shape_cast %160 : vector<1x2x32xf32> to vector<2x32xf32>
    %162 = vector.shape_cast %158 : vector<2x32xf32> to vector<1x2x32xf32>
    tpu.vector_store %arg10[%159, %c0_55, %c0_56], %162 {strides = array<i32>} : memref<8x2x32xf32, #tpu.memory_space<vmem>>, vector<1x2x32xf32>,
    %c4_i32 = arith.constant 4 : i32
    %163 = arith.index_cast %c4_i32 : i32 to index
    %c0_57 = arith.constant 0 : index
    %c0_58 = arith.constant 0 : index
    %164 = vector.load %arg9[%163, %c0_57, %c0_58] : memref<8x2x128xf32, #tpu.memory_space<vmem>>, vector<1x2x128xf32>
    %165 = vector.shape_cast %164 : vector<1x2x128xf32> to vector<2x128xf32>
    %cst_59 = arith.constant dense<0.000000e+00> : vector<2x128xf32>
    %166 = tpu.matmul %158, %1, %cst_59 {dimension_numbers = #tpu.dot_dimension_numbers<[1], [0], [0], [1], [0, 0, 1, 1], [], []>} : vector<2x32xf32>, vector<32x128xf32>, vector<2x128xf32> -> vector<2x128xf32>
    %167 = arith.addf %165, %166 : vector<2x128xf32>
    %168 = vector.extract_strided_slice %167 {offsets = [0, 0], sizes = [2, 32], strides = [1, 1]} : vector<2x128xf32> to vector<2x32xf32>
    %169 = arith.negf %168 : vector<2x32xf32>
    %170 = math.exp %169 : vector<2x32xf32>
    %cst_60 = arith.constant 1.000000e+00 : f32
    %171 = vector.broadcast %cst_60 : f32 to vector<2x32xf32>
    %172 = arith.addf %171, %170 : vector<2x32xf32>
    %173 = arith.divf %171, %172 : vector<2x32xf32>
    %174 = vector.extract_strided_slice %167 {offsets = [0, 32], sizes = [2, 32], strides = [1, 1]} : vector<2x128xf32> to vector<2x32xf32>
    %175 = arith.negf %174 : vector<2x32xf32>
    %176 = math.exp %175 : vector<2x32xf32>
    %cst_61 = arith.constant 1.000000e+00 : f32
    %177 = vector.broadcast %cst_61 : f32 to vector<2x32xf32>
    %178 = arith.addf %177, %176 : vector<2x32xf32>
    %179 = arith.divf %177, %178 : vector<2x32xf32>
    %180 = vector.extract_strided_slice %167 {offsets = [0, 64], sizes = [2, 32], strides = [1, 1]} : vector<2x128xf32> to vector<2x32xf32>
    %181 = math.tanh %180 : vector<2x32xf32>
    %182 = vector.extract_strided_slice %167 {offsets = [0, 96], sizes = [2, 32], strides = [1, 1]} : vector<2x128xf32> to vector<2x32xf32>
    %183 = arith.negf %182 : vector<2x32xf32>
    %184 = math.exp %183 : vector<2x32xf32>
    %cst_62 = arith.constant 1.000000e+00 : f32
    %185 = vector.broadcast %cst_62 : f32 to vector<2x32xf32>
    %186 = arith.addf %185, %184 : vector<2x32xf32>
    %187 = arith.divf %185, %186 : vector<2x32xf32>
    %188 = arith.mulf %179, %156 : vector<2x32xf32>
    %189 = arith.mulf %173, %181 : vector<2x32xf32>
    %190 = arith.addf %188, %189 : vector<2x32xf32>
    %191 = math.tanh %190 : vector<2x32xf32>
    %192 = arith.mulf %187, %191 : vector<2x32xf32>
    %193 = arith.index_cast %c4_i32 : i32 to index
    %c0_63 = arith.constant 0 : index
    %c0_64 = arith.constant 0 : index
    %194 = vector.load %arg10[%193, %c0_63, %c0_64] : memref<8x2x32xf32, #tpu.memory_space<vmem>>, vector<1x2x32xf32>
    %195 = vector.shape_cast %194 : vector<1x2x32xf32> to vector<2x32xf32>
    %196 = vector.shape_cast %192 : vector<2x32xf32> to vector<1x2x32xf32>
    tpu.vector_store %arg10[%193, %c0_63, %c0_64], %196 {strides = array<i32>} : memref<8x2x32xf32, #tpu.memory_space<vmem>>, vector<1x2x32xf32>,
    %c5_i32 = arith.constant 5 : i32
    %197 = arith.index_cast %c5_i32 : i32 to index
    %c0_65 = arith.constant 0 : index
    %c0_66 = arith.constant 0 : index
    %198 = vector.load %arg9[%197, %c0_65, %c0_66] : memref<8x2x128xf32, #tpu.memory_space<vmem>>, vector<1x2x128xf32>
    %199 = vector.shape_cast %198 : vector<1x2x128xf32> to vector<2x128xf32>
    %cst_67 = arith.constant dense<0.000000e+00> : vector<2x128xf32>
    %200 = tpu.matmul %192, %1, %cst_67 {dimension_numbers = #tpu.dot_dimension_numbers<[1], [0], [0], [1], [0, 0, 1, 1], [], []>} : vector<2x32xf32>, vector<32x128xf32>, vector<2x128xf32> -> vector<2x128xf32>
    %201 = arith.addf %199, %200 : vector<2x128xf32>
    %202 = vector.extract_strided_slice %201 {offsets = [0, 0], sizes = [2, 32], strides = [1, 1]} : vector<2x128xf32> to vector<2x32xf32>
    %203 = arith.negf %202 : vector<2x32xf32>
    %204 = math.exp %203 : vector<2x32xf32>
    %cst_68 = arith.constant 1.000000e+00 : f32
    %205 = vector.broadcast %cst_68 : f32 to vector<2x32xf32>
    %206 = arith.addf %205, %204 : vector<2x32xf32>
    %207 = arith.divf %205, %206 : vector<2x32xf32>
    %208 = vector.extract_strided_slice %201 {offsets = [0, 32], sizes = [2, 32], strides = [1, 1]} : vector<2x128xf32> to vector<2x32xf32>
    %209 = arith.negf %208 : vector<2x32xf32>
    %210 = math.exp %209 : vector<2x32xf32>
    %cst_69 = arith.constant 1.000000e+00 : f32
    %211 = vector.broadcast %cst_69 : f32 to vector<2x32xf32>
    %212 = arith.addf %211, %210 : vector<2x32xf32>
    %213 = arith.divf %211, %212 : vector<2x32xf32>
    %214 = vector.extract_strided_slice %201 {offsets = [0, 64], sizes = [2, 32], strides = [1, 1]} : vector<2x128xf32> to vector<2x32xf32>
    %215 = math.tanh %214 : vector<2x32xf32>
    %216 = vector.extract_strided_slice %201 {offsets = [0, 96], sizes = [2, 32], strides = [1, 1]} : vector<2x128xf32> to vector<2x32xf32>
    %217 = arith.negf %216 : vector<2x32xf32>
    %218 = math.exp %217 : vector<2x32xf32>
    %cst_70 = arith.constant 1.000000e+00 : f32
    %219 = vector.broadcast %cst_70 : f32 to vector<2x32xf32>
    %220 = arith.addf %219, %218 : vector<2x32xf32>
    %221 = arith.divf %219, %220 : vector<2x32xf32>
    %222 = arith.mulf %213, %190 : vector<2x32xf32>
    %223 = arith.mulf %207, %215 : vector<2x32xf32>
    %224 = arith.addf %222, %223 : vector<2x32xf32>
    %225 = math.tanh %224 : vector<2x32xf32>
    %226 = arith.mulf %221, %225 : vector<2x32xf32>
    %227 = arith.index_cast %c5_i32 : i32 to index
    %c0_71 = arith.constant 0 : index
    %c0_72 = arith.constant 0 : index
    %228 = vector.load %arg10[%227, %c0_71, %c0_72] : memref<8x2x32xf32, #tpu.memory_space<vmem>>, vector<1x2x32xf32>
    %229 = vector.shape_cast %228 : vector<1x2x32xf32> to vector<2x32xf32>
    %230 = vector.shape_cast %226 : vector<2x32xf32> to vector<1x2x32xf32>
    tpu.vector_store %arg10[%227, %c0_71, %c0_72], %230 {strides = array<i32>} : memref<8x2x32xf32, #tpu.memory_space<vmem>>, vector<1x2x32xf32>,
    %c6_i32 = arith.constant 6 : i32
    %231 = arith.index_cast %c6_i32 : i32 to index
    %c0_73 = arith.constant 0 : index
    %c0_74 = arith.constant 0 : index
    %232 = vector.load %arg9[%231, %c0_73, %c0_74] : memref<8x2x128xf32, #tpu.memory_space<vmem>>, vector<1x2x128xf32>
    %233 = vector.shape_cast %232 : vector<1x2x128xf32> to vector<2x128xf32>
    %cst_75 = arith.constant dense<0.000000e+00> : vector<2x128xf32>
    %234 = tpu.matmul %226, %1, %cst_75 {dimension_numbers = #tpu.dot_dimension_numbers<[1], [0], [0], [1], [0, 0, 1, 1], [], []>} : vector<2x32xf32>, vector<32x128xf32>, vector<2x128xf32> -> vector<2x128xf32>
    %235 = arith.addf %233, %234 : vector<2x128xf32>
    %236 = vector.extract_strided_slice %235 {offsets = [0, 0], sizes = [2, 32], strides = [1, 1]} : vector<2x128xf32> to vector<2x32xf32>
    %237 = arith.negf %236 : vector<2x32xf32>
    %238 = math.exp %237 : vector<2x32xf32>
    %cst_76 = arith.constant 1.000000e+00 : f32
    %239 = vector.broadcast %cst_76 : f32 to vector<2x32xf32>
    %240 = arith.addf %239, %238 : vector<2x32xf32>
    %241 = arith.divf %239, %240 : vector<2x32xf32>
    %242 = vector.extract_strided_slice %235 {offsets = [0, 32], sizes = [2, 32], strides = [1, 1]} : vector<2x128xf32> to vector<2x32xf32>
    %243 = arith.negf %242 : vector<2x32xf32>
    %244 = math.exp %243 : vector<2x32xf32>
    %cst_77 = arith.constant 1.000000e+00 : f32
    %245 = vector.broadcast %cst_77 : f32 to vector<2x32xf32>
    %246 = arith.addf %245, %244 : vector<2x32xf32>
    %247 = arith.divf %245, %246 : vector<2x32xf32>
    %248 = vector.extract_strided_slice %235 {offsets = [0, 64], sizes = [2, 32], strides = [1, 1]} : vector<2x128xf32> to vector<2x32xf32>
    %249 = math.tanh %248 : vector<2x32xf32>
    %250 = vector.extract_strided_slice %235 {offsets = [0, 96], sizes = [2, 32], strides = [1, 1]} : vector<2x128xf32> to vector<2x32xf32>
    %251 = arith.negf %250 : vector<2x32xf32>
    %252 = math.exp %251 : vector<2x32xf32>
    %cst_78 = arith.constant 1.000000e+00 : f32
    %253 = vector.broadcast %cst_78 : f32 to vector<2x32xf32>
    %254 = arith.addf %253, %252 : vector<2x32xf32>
    %255 = arith.divf %253, %254 : vector<2x32xf32>
    %256 = arith.mulf %247, %224 : vector<2x32xf32>
    %257 = arith.mulf %241, %249 : vector<2x32xf32>
    %258 = arith.addf %256, %257 : vector<2x32xf32>
    %259 = math.tanh %258 : vector<2x32xf32>
    %260 = arith.mulf %255, %259 : vector<2x32xf32>
    %261 = arith.index_cast %c6_i32 : i32 to index
    %c0_79 = arith.constant 0 : index
    %c0_80 = arith.constant 0 : index
    %262 = vector.load %arg10[%261, %c0_79, %c0_80] : memref<8x2x32xf32, #tpu.memory_space<vmem>>, vector<1x2x32xf32>
    %263 = vector.shape_cast %262 : vector<1x2x32xf32> to vector<2x32xf32>
    %264 = vector.shape_cast %260 : vector<2x32xf32> to vector<1x2x32xf32>
    tpu.vector_store %arg10[%261, %c0_79, %c0_80], %264 {strides = array<i32>} : memref<8x2x32xf32, #tpu.memory_space<vmem>>, vector<1x2x32xf32>,
    %c7_i32 = arith.constant 7 : i32
    %265 = arith.index_cast %c7_i32 : i32 to index
    %c0_81 = arith.constant 0 : index
    %c0_82 = arith.constant 0 : index
    %266 = vector.load %arg9[%265, %c0_81, %c0_82] : memref<8x2x128xf32, #tpu.memory_space<vmem>>, vector<1x2x128xf32>
    %267 = vector.shape_cast %266 : vector<1x2x128xf32> to vector<2x128xf32>
    %cst_83 = arith.constant dense<0.000000e+00> : vector<2x128xf32>
    %268 = tpu.matmul %260, %1, %cst_83 {dimension_numbers = #tpu.dot_dimension_numbers<[1], [0], [0], [1], [0, 0, 1, 1], [], []>} : vector<2x32xf32>, vector<32x128xf32>, vector<2x128xf32> -> vector<2x128xf32>
    %269 = arith.addf %267, %268 : vector<2x128xf32>
    %270 = vector.extract_strided_slice %269 {offsets = [0, 0], sizes = [2, 32], strides = [1, 1]} : vector<2x128xf32> to vector<2x32xf32>
    %271 = arith.negf %270 : vector<2x32xf32>
    %272 = math.exp %271 : vector<2x32xf32>
    %cst_84 = arith.constant 1.000000e+00 : f32
    %273 = vector.broadcast %cst_84 : f32 to vector<2x32xf32>
    %274 = arith.addf %273, %272 : vector<2x32xf32>
    %275 = arith.divf %273, %274 : vector<2x32xf32>
    %276 = vector.extract_strided_slice %269 {offsets = [0, 32], sizes = [2, 32], strides = [1, 1]} : vector<2x128xf32> to vector<2x32xf32>
    %277 = arith.negf %276 : vector<2x32xf32>
    %278 = math.exp %277 : vector<2x32xf32>
    %cst_85 = arith.constant 1.000000e+00 : f32
    %279 = vector.broadcast %cst_85 : f32 to vector<2x32xf32>
    %280 = arith.addf %279, %278 : vector<2x32xf32>
    %281 = arith.divf %279, %280 : vector<2x32xf32>
    %282 = vector.extract_strided_slice %269 {offsets = [0, 64], sizes = [2, 32], strides = [1, 1]} : vector<2x128xf32> to vector<2x32xf32>
    %283 = math.tanh %282 : vector<2x32xf32>
    %284 = vector.extract_strided_slice %269 {offsets = [0, 96], sizes = [2, 32], strides = [1, 1]} : vector<2x128xf32> to vector<2x32xf32>
    %285 = arith.negf %284 : vector<2x32xf32>
    %286 = math.exp %285 : vector<2x32xf32>
    %cst_86 = arith.constant 1.000000e+00 : f32
    %287 = vector.broadcast %cst_86 : f32 to vector<2x32xf32>
    %288 = arith.addf %287, %286 : vector<2x32xf32>
    %289 = arith.divf %287, %288 : vector<2x32xf32>
    %290 = arith.mulf %281, %258 : vector<2x32xf32>
    %291 = arith.mulf %275, %283 : vector<2x32xf32>
    %292 = arith.addf %290, %291 : vector<2x32xf32>
    %293 = math.tanh %292 : vector<2x32xf32>
    %294 = arith.mulf %289, %293 : vector<2x32xf32>
    %295 = arith.index_cast %c7_i32 : i32 to index
    %c0_87 = arith.constant 0 : index
    %c0_88 = arith.constant 0 : index
    %296 = vector.load %arg10[%295, %c0_87, %c0_88] : memref<8x2x32xf32, #tpu.memory_space<vmem>>, vector<1x2x32xf32>
    %297 = vector.shape_cast %296 : vector<1x2x32xf32> to vector<2x32xf32>
    %298 = vector.shape_cast %294 : vector<2x32xf32> to vector<1x2x32xf32>
    tpu.vector_store %arg10[%295, %c0_87, %c0_88], %298 {strides = array<i32>} : memref<8x2x32xf32, #tpu.memory_space<vmem>>, vector<1x2x32xf32>,
    %c8_i32 = arith.constant 8 : i32
    %c0_89 = arith.constant 0 : index
    %c0_90 = arith.constant 0 : index
    %c0_91 = arith.constant 0 : index
    %299 = vector.load %arg10[%c0_89, %c0_90, %c0_91] : memref<8x2x32xf32, #tpu.memory_space<vmem>>, vector<8x1x32xf32>
    %300 = vector.shape_cast %299 : vector<8x1x32xf32> to vector<8x32xf32>
    %c0_92 = arith.constant 0 : index
    %c0_93 = arith.constant 0 : index
    %c0_94 = arith.constant 0 : index
    %301 = vector.load %arg6[%c0_92, %c0_93, %c0_94] : memref<2x8x32xf32, #tpu.memory_space<vmem>>, vector<1x8x32xf32>
    %302 = vector.shape_cast %301 : vector<1x8x32xf32> to vector<8x32xf32>
    %303 = vector.shape_cast %300 : vector<8x32xf32> to vector<1x8x32xf32>
    tpu.vector_store %arg6[%c0_92, %c0_93, %c0_94], %303 {strides = array<i32>} : memref<2x8x32xf32, #tpu.memory_space<vmem>>, vector<1x8x32xf32>,
    %c0_95 = arith.constant 0 : index
    %c1_96 = arith.constant 1 : index
    %c0_97 = arith.constant 0 : index
    %304 = vector.load %arg10[%c0_95, %c1_96, %c0_97] : memref<8x2x32xf32, #tpu.memory_space<vmem>>, vector<8x1x32xf32>
    %305 = vector.shape_cast %304 : vector<8x1x32xf32> to vector<8x32xf32>
    %c1_98 = arith.constant 1 : index
    %c0_99 = arith.constant 0 : index
    %c0_100 = arith.constant 0 : index
    %306 = vector.load %arg6[%c1_98, %c0_99, %c0_100] : memref<2x8x32xf32, #tpu.memory_space<vmem>>, vector<1x8x32xf32>
    %307 = vector.shape_cast %306 : vector<1x8x32xf32> to vector<8x32xf32>
    %308 = vector.shape_cast %305 : vector<8x32xf32> to vector<1x8x32xf32>
    tpu.vector_store %arg6[%c1_98, %c0_99, %c0_100], %308 {strides = array<i32>} : memref<2x8x32xf32, #tpu.memory_space<vmem>>, vector<1x8x32xf32>,
    %c0_101 = arith.constant 0 : index
    %c0_102 = arith.constant 0 : index
    %309 = vector.load %arg7[%c0_101, %c0_102] : memref<2x32xf32, #tpu.memory_space<vmem>>, vector<2x32xf32>
    tpu.vector_store %arg7[%c0_101, %c0_102], %294 {strides = array<i32>} : memref<2x32xf32, #tpu.memory_space<vmem>>, vector<2x32xf32>,
    %c0_103 = arith.constant 0 : index
    %c0_104 = arith.constant 0 : index
    %310 = vector.load %arg8[%c0_103, %c0_104] : memref<2x32xf32, #tpu.memory_space<vmem>>, vector<2x32xf32>
    tpu.vector_store %arg8[%c0_103, %c0_104], %292 {strides = array<i32>} : memref<2x32xf32, #tpu.memory_space<vmem>>, vector<2x32xf32>,
    return
  }
  func.func @transform_0(%arg0: i32) -> (i32, i32, i32) {
    %c0_i32 = arith.constant 0 : i32
    %c0_i32_0 = arith.constant 0 : i32
    %c0_i32_1 = arith.constant 0 : i32
    %c0_i32_2 = arith.constant 0 : i32
    return %c0_i32, %c0_i32_0, %c0_i32_1 : i32, i32, i32
  }
  func.func @transform_1(%arg0: i32) -> (i32, i32, i32) {
    %c0_i32 = arith.constant 0 : i32
    %c0_i32_0 = arith.constant 0 : i32
    %c0_i32_1 = arith.constant 0 : i32
    %c0_i32_2 = arith.constant 0 : i32
    return %c0_i32, %c0_i32_0, %c0_i32_1 : i32, i32, i32
  }
  func.func @transform_2(%arg0: i32) -> (i32, i32) {
    %c0_i32 = arith.constant 0 : i32
    %c0_i32_0 = arith.constant 0 : i32
    %c0_i32_1 = arith.constant 0 : i32
    return %c0_i32, %c0_i32_0 : i32, i32
  }
  func.func @transform_3(%arg0: i32) -> (i32, i32) {
    %c0_i32 = arith.constant 0 : i32
    %c0_i32_0 = arith.constant 0 : i32
    %c0_i32_1 = arith.constant 0 : i32
    return %c0_i32, %c0_i32_0 : i32, i32
  }
  func.func @transform_4(%arg0: i32) -> (i32, i32) {
    %c0_i32 = arith.constant 0 : i32
    %c0_i32_0 = arith.constant 0 : i32
    %c0_i32_1 = arith.constant 0 : i32
    return %c0_i32, %c0_i32_0 : i32, i32
  }
  func.func @transform_5(%arg0: i32) -> (i32, i32, i32) {
    %c0_i32 = arith.constant 0 : i32
    %c0_i32_0 = arith.constant 0 : i32
    %c0_i32_1 = arith.constant 0 : i32
    %c0_i32_2 = arith.constant 0 : i32
    return %c0_i32, %c0_i32_0, %c0_i32_1 : i32, i32, i32
  }
  func.func @transform_6(%arg0: i32) -> (i32, i32) {
    %c0_i32 = arith.constant 0 : i32
    %c0_i32_0 = arith.constant 0 : i32
    %c0_i32_1 = arith.constant 0 : i32
    return %c0_i32, %c0_i32_0 : i32, i32
  }
  func.func @transform_7(%arg0: i32) -> (i32, i32) {
    %c0_i32 = arith.constant 0 : i32
    %c0_i32_0 = arith.constant 0 : i32
    %c0_i32_1 = arith.constant 0 : i32
    return %c0_i32, %c0_i32_0 : i32, i32
  }
}

</mosaic_0001>

<bundles_post_ra>
// kernel: tpu_custom_call.1
= control target key start
LH: loop header
LB: loop body
LE: loop exit
PB: predicated region body
PF: predicated region fallthrough
CT: control target
= control target key end

     0   :  { %13 = vsyncpa [#allocation5], 0  ;;  %s2153_s0 = inlined_call_operand.hbm [shape: f32[2,8,32], index: 0, kind: input, shape index: {}]   ;;  %s2154_s1 = inlined_call_operand.hbm [shape: f32[2,8,32], index: 1, kind: input, shape index: {}]   ;;  %s2155_s2 = inlined_call_operand.hbm [shape: f32[32,128], index: 2, kind: input, shape index: {}]   ;;  %s2156_s3 = inlined_call_operand.hbm [shape: f32[32,128], index: 3, kind: input, shape index: {}]   ;;  %s2157_s4 = inlined_call_operand.vmem [shape: f32[1,128], index: 4, kind: input, shape index: {}]   ;;  %s2158_s5 = inlined_call_operand.hbm [shape: f32[2,8,32], index: 5, kind: output, shape index: {0}]   ;;  %s2159_s6 = inlined_call_operand.hbm [shape: f32[2,32], index: 6, kind: output, shape index: {1}]   ;;  %s2160_s7 = inlined_call_operand.hbm [shape: f32[2,32], index: 7, kind: output, shape index: {2}]  }
   0x1   :  { %14 = vsyncpa [#allocation8], 0 }
   0x2   :  { %15 = vsyncpa [#allocation11], 0 }
   0x3   :  { %16 = vsyncpa [#allocation6], 0 }
   0x4   :  { %17 = vsyncpa [#allocation14], 0  ;;  %s1836_s24 = smov [#allocation7]   ;;  %s1837_s26 = smov [#allocation4]  }
   0x5   :  { %s35_s25 = sshll.u32 %s1836_s24, 4  ;;  %s23_s27 = sshll.u32 %s1837_s26, 4  ;;  %s36_s25 = int_to_ptr.vmem [resolvable:$true] %s35_s25  ;;  %s1892_s27 = int_to_ptr.vmem [resolvable:$true] %s23_s27 }
   0x6   :  { %s1672_s30 = scalar_lea.hbm %s2154_s1, 256 }
   0x7   :  { %p1673_p0 = scmp.ne.s32.totalorder %s2154_s1, %s1672_s30  ;;  %p1676_p1 = scmp.lt.u32.totalorder %s1672_s30, %s2154_s1 }
   0x9   :  { %p1678_p2 = pnand %p1676_p1, %p1673_p0 }
   0xb   :  { %1681 = shalt.err (!%p1678_p2)
}
   0xc   :  { %s1682_s12 = scalar_lea.vmem %s36_s25, 256  ;;  %p1687_p4 = scmp.lt.s32.totalorder %s36_s25, %s36_s25 }
   0xd   :  { %p1683_p3 = scmp.ne.s32.totalorder %s36_s25, %s1682_s12  ;;  %p1688_p5 = scmp.lt.s32.totalorder %s1682_s12, %s1682_s12 }
   0xf   :  { %p1689_p6 = por %p1688_p5, %p1687_p4 }
  0x11   :  { %p1690_p7 = pnand %p1689_p6, %p1683_p3 }
  0x13   :  { %1693 = shalt.err (!%p1690_p7)
}
  0x14   :  { %s1838_s13 = smov 128   ;;  %s1839_s14 = smov 8  }
  0x15   :  { %41 = dma.hbm_to_vmem [thread:$0]  %s2154_s1, 256, %s36_s25, [#allocation8], %s1838_s13, %s1838_s13, %s1839_s14  }
  0x16   :  { %s1694_s19 = scalar_lea.hbm %s2153_s0, 256 }
  0x17   :  { %p1695_p8 = scmp.ne.s32.totalorder %s2153_s0, %s1694_s19  ;;  %p1698_p9 = scmp.lt.u32.totalorder %s1694_s19, %s2153_s0 }
  0x19   :  { %p1700_p10 = pnand %p1698_p9, %p1695_p8 }
  0x1b   :  { %1703 = shalt.err (!%p1700_p10)
}
  0x1c   :  { %s1704_s24 = scalar_lea.vmem %s1892_s27, 256  ;;  %p1709_p12 = scmp.lt.s32.totalorder %s1892_s27, %s1892_s27 }
  0x1d   :  { %p1705_p11 = scmp.ne.s32.totalorder %s1892_s27, %s1704_s24  ;;  %p1710_p13 = scmp.lt.s32.totalorder %s1704_s24, %s1704_s24 }
  0x1f   :  { %p1711_p0 = por %p1710_p13, %p1709_p12 }
  0x21   :  { %p1712_p1 = pnand %p1711_p0, %p1705_p11 }
  0x23   :  { %1715 = shalt.err (!%p1712_p1)
}
  0x24   :  { %29 = dma.hbm_to_vmem [thread:$0]  %s2153_s0, 256, %s1892_s27, [#allocation5], %s1838_s13, %s1838_s13, %s1839_s14  }
  0x25   :  { %s1840_s26 = smov [#allocation9]   ;;  %s1841_s29 = smov [#allocation10]  }
  0x26   :  { %s47_s28 = sshll.u32 %s1840_s26, 4  ;;  %s59_s30 = sshll.u32 %s1841_s29, 4  ;;  %s48_s28 = int_to_ptr.vmem [resolvable:$true] %s47_s28  ;;  %s1929_s30 = int_to_ptr.vmem [resolvable:$true] %s59_s30 }
  0x27   :  { %s1716_s10 = scalar_lea.hbm %s2155_s2, 512 }
  0x28   :  { %p1717_p2 = scmp.ne.s32.totalorder %s2155_s2, %s1716_s10  ;;  %p1720_p3 = scmp.lt.u32.totalorder %s1716_s10, %s2155_s2 }
  0x2a   :  { %p1722_p4 = pnand %p1720_p3, %p1717_p2 }
  0x2c   :  { %1725 = shalt.err (!%p1722_p4)
}
  0x2d   :  { %s1726_s0 = scalar_lea.vmem %s48_s28, 512  ;;  %p1731_p6 = scmp.lt.s32.totalorder %s48_s28, %s48_s28 }
  0x2e   :  { %p1727_p5 = scmp.ne.s32.totalorder %s48_s28, %s1726_s0  ;;  %p1732_p7 = scmp.lt.s32.totalorder %s1726_s0, %s1726_s0 }
  0x30   :  { %p1733_p8 = por %p1732_p7, %p1731_p6 }
  0x32   :  { %p1734_p9 = pnand %p1733_p8, %p1727_p5 }
  0x34   :  { %1737 = shalt.err (!%p1734_p9)
}
  0x35   :  { %53 = dma.hbm_to_vmem [thread:$0]  %s2155_s2, 512, %s48_s28, [#allocation8], %s1838_s13, %s1838_s13, %s1839_s14  }
  0x36   :  { %s1738_s20 = scalar_lea.hbm %s2156_s3, 512 }
  0x37   :  { %p1739_p10 = scmp.ne.s32.totalorder %s2156_s3, %s1738_s20  ;;  %p1742_p11 = scmp.lt.u32.totalorder %s1738_s20, %s2156_s3 }
  0x39   :  { %p1744_p12 = pnand %p1742_p11, %p1739_p10 }
  0x3b   :  { %1747 = shalt.err (!%p1744_p12)
}
  0x3c   :  { %s1748_s1 = scalar_lea.vmem %s1929_s30, 512  ;;  %p1753_p0 = scmp.lt.s32.totalorder %s1929_s30, %s1929_s30 }
  0x3d   :  { %p1749_p13 = scmp.ne.s32.totalorder %s1929_s30, %s1748_s1  ;;  %p1754_p1 = scmp.lt.s32.totalorder %s1748_s1, %s1748_s1 }
  0x3f   :  { %p1755_p2 = por %p1754_p1, %p1753_p0 }
  0x41   :  { %p1756_p3 = pnand %p1755_p2, %p1749_p13 }
  0x43   :  { %1759 = shalt.err (!%p1756_p3)
}
  0x44   :  { %65 = dma.hbm_to_vmem [thread:$0]  %s2156_s3, 512, %s1929_s30, [#allocation11], %s1838_s13, %s1838_s13, %s1839_s14  }
  0x45   :  { %1826 = dma.done.wait [#allocation5], 256  }
  0x46   :  { %1827 = vsyncadd [#allocation5], 4294967040 }
  0x47   :  { %1828 = dma.done.wait [#allocation8], 768  }
  0x48   :  { %1829 = vsyncadd [#allocation8], 4294966528 }
  0x49   :  { %1830 = dma.done.wait [#allocation11], 512  }
  0x4a   :  { %1831 = vsyncadd [#allocation11], 4294966784  ;;  %v1842_v0 = vmov 0.0|0.0   ;;  %vm1843_vm0 = vmmov 0   ;;  %v1844_v1 = vmov 0.0   ;;  %v80_v2 = vld [vmem:[#allocation9] sm:$0xff]  ;;  %v177_v22 = vlaneseq }
  0x4b   :  { %1532 = vmatprep.subr.bf16.mxu0 %v1842_v0  ;;  %1538 = vmatprep.subr.bf16.mxu1 %v1842_v0  ;;  %v81_v3 = vld [vmem:[#allocation9 + $0x8] sm:$0xff]  ;;  %v82_v4 = vld [vmem:[#allocation9 + $0x10] sm:$0xff]  ;;  %v83_v6 = vld [vmem:[#allocation9 + $0x18] sm:$0xff]  ;;  %vm98_vm1 = vcmask 261120   ;;  %v1845_v20 = vmov 1966171168  }
  0x4c   :  { %1430 = vmatprep.mubr.msk.f32.mxu0 %vm1843_vm0, %v1844_v1  ;;  %1441 = vmatprep.mubr.msk.f32.mxu1 %vm1843_vm0, %v1844_v1  ;;  %v1533_v5 = vpack.c.bf16 %v81_v3, %v80_v2  ;;  %v89_v7 = vld [vmem:[#allocation4] sm:$0xff]  ;;  %v1536_v8 = vpack.c.bf16 %v83_v6, %v82_v4  ;;  %v90_v9 = vld [vmem:[#allocation7] sm:$0xff]  ;;  %v239_v10 = vld [vmem:[#allocation4 + $0x8] sm:$0xff]  ;;  %v175_v21 = vunpack.c.l.s4 %v1845_v20  ;;  %v178_v24 = vshrl.u32 %v177_v22, 7  ;;  %s1847_s28 = smov 32   ;;  %s1848_s29 = smov 96  }
  0x4d   :  { %v241_v11 = vld [vmem:[#allocation7 + $0x8] sm:$0xff]  ;;  %v84_v12 = vld [vmem:[#allocation10] sm:$0xff]  ;;  %v85_v13 = vld [vmem:[#allocation10 + $0x8] sm:$0xff]  ;;  %v91_v14 = vmul.f32 %v90_v9, %v89_v7  ;;  %vm485_vm2 = vcmask 254976   ;;  %s1849_s30 = smov [#allocation13]   ;;  %s1850_s9 = smov [#allocation15]  }
  0x4e   :  { %1534 = vmatpush3.bf16.msra.mxu0 %v1533_v5  ;;  %1540 = vmatpush3.bf16.msra.mxu1 %v1533_v5  ;;  %v242_v15 = vmul.f32 %v241_v11, %v239_v10  ;;  %v1974_v16 = vpack.c.bf16 %v85_v13, %v84_v12  ;;  %v86_v17 = vld [vmem:[#allocation10 + $0x10] sm:$0xff]  ;;  %v87_v18 = vld [vmem:[#allocation10 + $0x18] sm:$0xff]  ;;  %v176_v23 = vunpack.c.0.s8 %v175_v21  ;;  %v1346_v25 = vld [vmem:[%s2157_s4] ss:$0 sm:$0xff]  ;;  %s1846_s4 = smov 64   ;;  %s1318_s8 = sshll.u32 %s1849_s30, 4  ;;  %s2085_s8 = int_to_ptr.vmem [resolvable:$true] %s1318_s8 }
  0x4f   :  { %1535 = vmatprep.subr.bf16.mxu0 %v1842_v0  ;;  %1541 = vmatprep.subr.bf16.mxu1 %v1842_v0  ;;  %v1981_v19 = vpack.c.bf16 %v87_v18, %v86_v17  ;;  %s1328_s10 = sshll.u32 %s1850_s9, 4  ;;  %vm1239_vm3 = vcmask 1041409   ;;  %vm1242_vm4 = vcmask 1042434   ;;  %s1760_s11 = scalar_lea.vmem %s2085_s8, 32  ;;  %s2088_s10 = int_to_ptr.vmem [resolvable:$true] %s1328_s10 }
  0x50   :  { %v179_v26 = vsub.s32 %v176_v23, %v178_v24  ;;  %p1761_p4 = scmp.ne.s32.totalorder %s2085_s8, %s1760_s11  ;;  %p1765_p5 = scmp.lt.s32.totalorder %s2085_s8, %s2085_s8 }
  0x51   :  { %p1766_p6 = scmp.lt.s32.totalorder %s1760_s11, %s1760_s11 }
  0x52   :  { %1537 = vmatpush3.bf16.msra.mxu0 %v1536_v8  ;;  %1543 = vmatpush3.bf16.msra.mxu1 %v1536_v8 }
  0x53   :  { %1544 = vmatprep.subr.bf16.mxu0 %v1842_v0  ;;  %1550 = vmatprep.subr.bf16.mxu1 %v1842_v0  ;;  %p1767_p7 = por %p1766_p6, %p1765_p5 }
  0x55   :  { %1431 = vmatmul.mubr.msk.f32.vlgmr.msra.gmra.mrb[0].mxu0 %vm98_vm1, %v91_v14  ;;  %1442 = vmatmul.mubr.msk.f32.vlgmr.msra.gmra.mrb[0].mxu1 %vm98_vm1, %v242_v15  ;;  %p1768_p8 = pnand %p1767_p7, %p1761_p4 }
  0x56   :  { %1546 = vmatpush3.bf16.msra.mxu0 %v1974_v16  ;;  %1452 = vmatprep.mubr.msk.f32.mxu0 %vm1843_vm0, %v1844_v1 }
  0x57   :  { %1547 = vmatprep.subr.bf16.mxu0 %v1842_v0  ;;  %1552 = vmatpush3.bf16.msra.mxu1 %v1974_v16 }
  0x58   :  { %1553 = vmatprep.subr.bf16.mxu1 %v1842_v0  ;;  %1463 = vmatprep.mubr.msk.f32.mxu1 %vm1843_vm0, %v1844_v1 }
  0x5a   :  { %1549 = vmatpush3.bf16.msra.mxu0 %v1981_v19 }
  0x5b   :  { %1555 = vmatpush3.bf16.msra.mxu1 %v1981_v19  ;;  %1556 = vmatprep.subr.bf16.mxu0 %v1842_v0 }
  0x5c   :  { %1562 = vmatprep.subr.bf16.mxu1 %v1842_v0 }
  0x5d   :  { %1453 = vmatmul.mubr.f32.vlgmr.msra.gmra.mrb[2].mxu0 %v1844_v1 }
  0x5e   :  { %1558 = vmatpush3.bf16.msra.mxu0 %v1974_v16  ;;  %1474 = vmatprep.mubr.msk.f32.mxu0 %vm1843_vm0, %v1844_v1 }
  0x5f   :  { %1559 = vmatprep.subr.bf16.mxu0 %v1842_v0 }
  0x62   :  { %1561 = vmatpush3.bf16.msra.mxu0 %v1981_v19 }
  0x63   :  { %1568 = vmatprep.subr.bf16.mxu0 %v1842_v0 }
 0x128   :  { %v168_v27 = vpop.f32.mrb[0].mxu0  ;;  %v312_v28 = vpop.f32.mrb[0].mxu1 }
 0x129   :  { %v169_v29 = vadd.f32 %v1346_v25, %v168_v27  ;;  %v313_v30 = vadd.f32 %v1346_v25, %v312_v28  ;;  %v1432_v31 = vpop.f32.mrb[1].mxu0  ;;  %v1443_v32 = vpop.f32.mrb[1].mxu1 }
 0x12b   :  { %v173_v33 = vcombine.high %v169_v29, %v169_v29  ;;  %v180_v34 = vrot.slane %v169_v29, %v179_v26  ;;  %v317_v35 = vcombine.high %v313_v30, %v313_v30  ;;  %v324_v36 = vrot.slane %v313_v30, %v179_v26 }
 0x12d   :  { %v187_v37 = vrot.slane %v173_v33, %v179_v26  ;;  %v188_v38 = vcombine.high %v180_v34, %v180_v34  ;;  %v196_v39 = vrot.slane %v180_v34, %v179_v26  ;;  %1348 = vst.sshfl [vmem:[#allocation2] sm:$0x1 pattern:$0x73625140] %v180_v34  ;;  %v331_v40 = vrot.slane %v317_v35, %v179_v26 }
 0x12e   :  { %1353 = vst.sshfl [vmem:[#allocation2 + $0x1] sm:$0x1 pattern:$0x73625140] %v324_v36  ;;  %v332_v41 = vcombine.high %v324_v36, %v324_v36  ;;  %v340_v42 = vrot.slane %v324_v36, %v179_v26 }
 0x12f   :  { %v189_v43 = vcombine.high %v187_v37, %v187_v37  ;;  %v203_v44 = vrot.slane %v187_v37, %v179_v26  ;;  %v210_v45 = vrot.slane %v188_v38, %v179_v26  ;;  %v218_v46 = vcombine.high %v196_v39, %v196_v39  ;;  %1349 = vst.sshfl [vmem:[#allocation2 + $0x2] sm:$0x1 pattern:$0x73625140] %v188_v38 }
 0x130   :  { %1350 = vst.sshfl [vmem:[#allocation2 + $0x8] sm:$0x1 pattern:$0x73625140] %v187_v37  ;;  %v333_v47 = vcombine.high %v331_v40, %v331_v40  ;;  %v347_v48 = vrot.slane %v331_v40, %v179_v26  ;;  %v354_v49 = vrot.slane %v332_v41, %v179_v26  ;;  %v362_v50 = vcombine.high %v340_v42, %v340_v42  ;;  %v452_v51 = vpop.f32.mrb[2].mxu0 }
 0x131   :  { %1355 = vst.sshfl [vmem:[#allocation2 + $0x9] sm:$0x1 pattern:$0x73625140] %v331_v40  ;;  %v217_v52 = vrot.slane %v189_v43, %v179_v26  ;;  %v219_v53 = vcombine.high %v203_v44, %v203_v44  ;;  %v220_v54 = vcombine.high %v210_v45, %v210_v45  ;;  %232 = vst [vmem:[#allocation2 + $0x4] sm:$0x1] %v218_v46 }
 0x132   :  { %1354 = vst.sshfl [vmem:[#allocation2 + $0x3] sm:$0x1 pattern:$0x73625140] %v332_v41  ;;  %v1454_v55 = vpop.f32.mrb[3].mxu0  ;;  %v361_v56 = vrot.slane %v333_v47, %v179_v26  ;;  %v363_v57 = vcombine.high %v347_v48, %v347_v48  ;;  %v364_v58 = vcombine.high %v354_v49, %v354_v49 }
 0x133   :  { %1351 = vst.sshfl [vmem:[#allocation2 + $0xa] sm:$0x1 pattern:$0x73625140] %v189_v43  ;;  %376 = vst [vmem:[#allocation2 + $0x5] sm:$0x1] %v362_v50  ;;  %v221_v59 = vcombine.high %v217_v52, %v217_v52 }
 0x134   :  { %1356 = vst.sshfl [vmem:[#allocation2 + $0xb] sm:$0x1 pattern:$0x73625140] %v333_v47  ;;  %233 = vst [vmem:[#allocation2 + $0x6] sm:$0x1] %v220_v54  ;;  %v365_v60 = vcombine.high %v361_v56, %v361_v56 }
 0x135   :  { %236 = vst [vmem:[#allocation2 + $0xc] sm:$0x1] %v219_v53  ;;  %377 = vst [vmem:[#allocation2 + $0x7] sm:$0x1] %v364_v58  ;;  %v382_v61 = vld [vmem:[#allocation2] sm:$0x3] }
 0x136   :  { %380 = vst [vmem:[#allocation2 + $0xd] sm:$0x1] %v363_v57  ;;  %237 = vst [vmem:[#allocation2 + $0xe] sm:$0x1] %v221_v59  ;;  %v456_v62 = vadd.f32 %v452_v51, %v382_v61 }
 0x137   :  { %381 = vst [vmem:[#allocation2 + $0xf] sm:$0x1] %v365_v60 }
 0x138   :  { %1608 = vtanh.f32 %v456_v62  ;;  %v1357_v2 = vmul.f32 -1.442695, %v456_v62 }
 0x139   :  { %v488_v15 = vld [vmem:[#allocation2 + $0x2] sm:$0x3] }
 0x13a   :  { %1610 = vpow2.f32 %v1357_v2  ;;  %v593_v35 = vld [vmem:[#allocation2 + $0x4] sm:$0x3] }
 0x13c   :  { %v698_v53 = vld [vmem:[#allocation2 + $0x6] sm:$0x3] }
 0x142   :  { %v1609_v63 = vpop.eup %1608 }
 0x143   :  { %466 = vrot.lane.b32.xlu0 %v1609_v63, %s1846_s4 }
 0x144   :  { %v1611_v3 = vpop.eup %1610 }
 0x145   :  { %v460_v4 = vadd.f32 1.0, %v1611_v3 }
 0x147   :  { %1612 = vrcp.f32 %v460_v4 }
 0x151   :  { %v1613_v5 = vpop.eup %1612 }
 0x152   :  { %v464_v8 = vmul.f32 0.0, %v1613_v5 }
 0x1b5   :  { %v467_v6 = vpop.permute.xlu0 %466 }
 0x1b6   :  { %v469_v7 = vmul.f32 %v1613_v5, %v467_v6 }
 0x1b8   :  { %471 = vrot.lane.b32.xlu0 %v469_v7, %s1847_s28 }
 0x22a   :  { %v472_v9 = vpop.permute.xlu0 %471 }
 0x22b   :  { %v474_v10 = vadd.f32 %v472_v9, %v464_v8  ;;  %v803_v9 = vld [vmem:[#allocation2 + $0x8] sm:$0x3] }
 0x22d   :  { %1614 = vtanh.f32 %v474_v10 }
 0x237   :  { %v1615_v11 = vpop.eup %1614 }
 0x238   :  { %477 = vrot.lane.b32.xlu1 %v1615_v11, %s1846_s4 }
 0x2aa   :  { %v478_v12 = vpop.permute.xlu1 %477 }
 0x2ab   :  { %v480_v13 = vmul.f32 %v1613_v5, %v478_v12 }
 0x2ad   :  { %482 = vrot.lane.b32.xlu1 %v480_v13, %s1847_s28 }
 0x31f   :  { %v483_v14 = vpop.permute.xlu1 %482 }
 0x320   :  { %486 = vst.msk [vmem:[#allocation3] sm:$0x3] %vm485_vm2, %v483_v14  ;;  %1464 = vmatmul.mubr.msk.f32.vlgmr.msra.gmra.mrb[2].mxu1 %vm98_vm1, %v483_v14 }
 0x321   :  { %1564 = vmatpush3.bf16.msra.mxu1 %v1974_v16  ;;  %1485 = vmatprep.mubr.msk.f32.mxu1 %vm1843_vm0, %v1844_v1 }
 0x322   :  { %1565 = vmatprep.subr.bf16.mxu1 %v1842_v0 }
 0x325   :  { %1567 = vmatpush3.bf16.msra.mxu1 %v1981_v19 }
 0x326   :  { %1574 = vmatprep.subr.bf16.mxu1 %v1842_v0 }
 0x3f3   :  { %v557_v17 = vpop.f32.mrb[2].mxu1 }
 0x3f4   :  { %v561_v18 = vadd.f32 %v557_v17, %v488_v15  ;;  %v1465_v20 = vpop.f32.mrb[3].mxu1 }
 0x3f6   :  { %1616 = vtanh.f32 %v561_v18  ;;  %v1359_v22 = vmul.f32 -1.442695, %v561_v18 }
 0x3f8   :  { %1618 = vpow2.f32 %v1359_v22 }
 0x400   :  { %v1617_v21 = vpop.eup %1616 }
 0x401   :  { %571 = vrot.lane.b32.xlu0 %v1617_v21, %s1846_s4 }
 0x402   :  { %v1619_v23 = vpop.eup %1618 }
 0x403   :  { %v565_v24 = vadd.f32 1.0, %v1619_v23 }
 0x405   :  { %1620 = vrcp.f32 %v565_v24 }
 0x40f   :  { %v1621_v25 = vpop.eup %1620 }
 0x410   :  { %v569_v28 = vmul.f32 %v1621_v25, %v474_v10 }
 0x473   :  { %v572_v26 = vpop.permute.xlu0 %571 }
 0x474   :  { %v574_v27 = vmul.f32 %v1621_v25, %v572_v26 }
 0x476   :  { %576 = vrot.lane.b32.xlu1 %v574_v27, %s1847_s28 }
 0x4e8   :  { %v577_v29 = vpop.permute.xlu1 %576 }
 0x4e9   :  { %v579_v30 = vadd.f32 %v577_v29, %v569_v28  ;;  %v908_v29 = vld [vmem:[#allocation2 + $0xa] sm:$0x3] }
 0x4eb   :  { %1622 = vtanh.f32 %v579_v30 }
 0x4f5   :  { %v1623_v31 = vpop.eup %1622 }
 0x4f6   :  { %582 = vrot.lane.b32.xlu0 %v1623_v31, %s1846_s4 }
 0x568   :  { %v583_v32 = vpop.permute.xlu0 %582 }
 0x569   :  { %v585_v33 = vmul.f32 %v1621_v25, %v583_v32 }
 0x56b   :  { %587 = vrot.lane.b32.xlu1 %v585_v33, %s1847_s28 }
 0x5dd   :  { %v588_v34 = vpop.permute.xlu1 %587 }
 0x5de   :  { %591 = vst.msk [vmem:[#allocation3 + $0x2] sm:$0x3] %vm485_vm2, %v588_v34  ;;  %1475 = vmatmul.mubr.msk.f32.vlgmr.msra.gmra.mrb[4].mxu0 %vm98_vm1, %v588_v34 }
 0x5df   :  { %1570 = vmatpush3.bf16.msra.mxu0 %v1974_v16  ;;  %1496 = vmatprep.mubr.msk.f32.mxu0 %vm1843_vm0, %v1844_v1 }
 0x5e0   :  { %1571 = vmatprep.subr.bf16.mxu0 %v1842_v0 }
 0x5e3   :  { %1573 = vmatpush3.bf16.msra.mxu0 %v1981_v19 }
 0x5e4   :  { %1580 = vmatprep.subr.bf16.mxu0 %v1842_v0 }
 0x6b1   :  { %v662_v36 = vpop.f32.mrb[4].mxu0 }
 0x6b2   :  { %v666_v37 = vadd.f32 %v662_v36, %v593_v35  ;;  %v1476_v38 = vpop.f32.mrb[5].mxu0 }
 0x6b4   :  { %1624 = vtanh.f32 %v666_v37  ;;  %v1361_v40 = vmul.f32 -1.442695, %v666_v37 }
 0x6b6   :  { %1626 = vpow2.f32 %v1361_v40 }
 0x6be   :  { %v1625_v39 = vpop.eup %1624 }
 0x6bf   :  { %676 = vrot.lane.b32.xlu0 %v1625_v39, %s1846_s4 }
 0x6c0   :  { %v1627_v41 = vpop.eup %1626 }
 0x6c1   :  { %v670_v42 = vadd.f32 1.0, %v1627_v41 }
 0x6c3   :  { %1628 = vrcp.f32 %v670_v42 }
 0x6cd   :  { %v1629_v43 = vpop.eup %1628 }
 0x6ce   :  { %v674_v46 = vmul.f32 %v1629_v43, %v579_v30 }
 0x731   :  { %v677_v44 = vpop.permute.xlu0 %676 }
 0x732   :  { %v679_v45 = vmul.f32 %v1629_v43, %v677_v44 }
 0x734   :  { %681 = vrot.lane.b32.xlu1 %v679_v45, %s1847_s28 }
 0x7a6   :  { %v682_v47 = vpop.permute.xlu1 %681 }
 0x7a7   :  { %v684_v48 = vadd.f32 %v682_v47, %v674_v46 }
 0x7a9   :  { %1630 = vtanh.f32 %v684_v48 }
 0x7b3   :  { %v1631_v49 = vpop.eup %1630 }
 0x7b4   :  { %687 = vrot.lane.b32.xlu0 %v1631_v49, %s1846_s4 }
 0x826   :  { %v688_v50 = vpop.permute.xlu0 %687 }
 0x827   :  { %v690_v51 = vmul.f32 %v1629_v43, %v688_v50  ;;  %v1013_v43 = vld [vmem:[#allocation2 + $0xc] sm:$0x3] }
 0x829   :  { %692 = vrot.lane.b32.xlu1 %v690_v51, %s1847_s28 }
 0x89b   :  { %v693_v52 = vpop.permute.xlu1 %692 }
 0x89c   :  { %696 = vst.msk [vmem:[#allocation3 + $0x4] sm:$0x3] %vm485_vm2, %v693_v52  ;;  %1486 = vmatmul.mubr.msk.f32.vlgmr.msra.gmra.mrb[4].mxu1 %vm98_vm1, %v693_v52 }
 0x89d   :  { %1576 = vmatpush3.bf16.msra.mxu1 %v1974_v16  ;;  %1507 = vmatprep.mubr.msk.f32.mxu1 %vm1843_vm0, %v1844_v1 }
 0x89e   :  { %1577 = vmatprep.subr.bf16.mxu1 %v1842_v0 }
 0x8a1   :  { %1579 = vmatpush3.bf16.msra.mxu1 %v1981_v19 }
 0x8a2   :  { %1586 = vmatprep.subr.bf16.mxu1 %v1842_v0 }
 0x96f   :  { %v767_v54 = vpop.f32.mrb[4].mxu1 }
 0x970   :  { %v771_v55 = vadd.f32 %v767_v54, %v698_v53  ;;  %v1487_v56 = vpop.f32.mrb[5].mxu1 }
 0x972   :  { %1632 = vtanh.f32 %v771_v55  ;;  %v1363_v58 = vmul.f32 -1.442695, %v771_v55 }
 0x974   :  { %1634 = vpow2.f32 %v1363_v58 }
 0x97c   :  { %v1633_v57 = vpop.eup %1632 }
 0x97d   :  { %781 = vrot.lane.b32.xlu0 %v1633_v57, %s1846_s4 }
 0x97e   :  { %v1635_v59 = vpop.eup %1634 }
 0x97f   :  { %v775_v60 = vadd.f32 1.0, %v1635_v59 }
 0x981   :  { %1636 = vrcp.f32 %v775_v60 }
 0x98b   :  { %v1637_v61 = vpop.eup %1636 }
 0x98c   :  { %v779_v2 = vmul.f32 %v1637_v61, %v684_v48 }
 0x9ef   :  { %v782_v62 = vpop.permute.xlu0 %781 }
 0x9f0   :  { %v784_v63 = vmul.f32 %v1637_v61, %v782_v62 }
 0x9f2   :  { %786 = vrot.lane.b32.xlu1 %v784_v63, %s1847_s28 }
 0xa64   :  { %v787_v3 = vpop.permute.xlu1 %786 }
 0xa65   :  { %v789_v4 = vadd.f32 %v787_v3, %v779_v2 }
 0xa67   :  { %1638 = vtanh.f32 %v789_v4 }
 0xa71   :  { %v1639_v5 = vpop.eup %1638 }
 0xa72   :  { %792 = vrot.lane.b32.xlu0 %v1639_v5, %s1846_s4 }
 0xae4   :  { %v793_v6 = vpop.permute.xlu0 %792 }
 0xae5   :  { %v795_v7 = vmul.f32 %v1637_v61, %v793_v6  ;;  %v1118_v61 = vld [vmem:[#allocation2 + $0xe] sm:$0x3] }
 0xae7   :  { %797 = vrot.lane.b32.xlu1 %v795_v7, %s1847_s28 }
 0xb59   :  { %v798_v8 = vpop.permute.xlu1 %797 }
 0xb5a   :  { %801 = vst.msk [vmem:[#allocation3 + $0x6] sm:$0x3] %vm485_vm2, %v798_v8  ;;  %1497 = vmatmul.mubr.msk.f32.vlgmr.msra.gmra.mrb[6].mxu0 %vm98_vm1, %v798_v8 }
 0xb5b   :  { %1582 = vmatpush3.bf16.msra.mxu0 %v1974_v16  ;;  %1518 = vmatprep.mubr.msk.f32.mxu0 %vm1843_vm0, %v1844_v1 }
 0xb5c   :  { %1583 = vmatprep.subr.bf16.mxu0 %v1842_v0 }
 0xb5f   :  { %1585 = vmatpush3.bf16.msra.mxu0 %v1981_v19 }
 0xc2d   :  { %v872_v10 = vpop.f32.mrb[6].mxu0 }
 0xc2e   :  { %v876_v11 = vadd.f32 %v872_v10, %v803_v9  ;;  %v1498_v12 = vpop.f32.mrb[7].mxu0 }
 0xc30   :  { %1640 = vtanh.f32 %v876_v11  ;;  %v1365_v14 = vmul.f32 -1.442695, %v876_v11 }
 0xc32   :  { %1642 = vpow2.f32 %v1365_v14 }
 0xc3a   :  { %v1641_v13 = vpop.eup %1640 }
 0xc3b   :  { %886 = vrot.lane.b32.xlu0 %v1641_v13, %s1846_s4 }
 0xc3c   :  { %v1643_v15 = vpop.eup %1642 }
 0xc3d   :  { %v880_v17 = vadd.f32 1.0, %v1643_v15 }
 0xc3f   :  { %1644 = vrcp.f32 %v880_v17 }
 0xc49   :  { %v1645_v18 = vpop.eup %1644 }
 0xc4a   :  { %v884_v22 = vmul.f32 %v1645_v18, %v789_v4 }
 0xcad   :  { %v887_v20 = vpop.permute.xlu0 %886 }
 0xcae   :  { %v889_v21 = vmul.f32 %v1645_v18, %v887_v20  ;;  %v1262_v20 = vld [vmem:[#allocation3 + $0x3] sm:$0x1] }
 0xcb0   :  { %891 = vrot.lane.b32.xlu1 %v889_v21, %s1847_s28  ;;  %v1224_v21 = vld [vmem:[#allocation3 + $0x4] sm:$0x1] }
 0xd22   :  { %v892_v23 = vpop.permute.xlu1 %891 }
 0xd23   :  { %v894_v24 = vadd.f32 %v892_v23, %v884_v22  ;;  %v2079_v22 = vld [vmem:[#allocation3 + $0x5] sm:$0x1]  ;;  %v2081_v23 = vld [vmem:[#allocation3 + $0x6] sm:$0x1] }
 0xd25   :  { %1646 = vtanh.f32 %v894_v24 }
 0xd2f   :  { %v1647_v25 = vpop.eup %1646 }
 0xd30   :  { %897 = vrot.lane.b32.xlu0 %v1647_v25, %s1846_s4 }
 0xda2   :  { %v898_v26 = vpop.permute.xlu0 %897 }
 0xda3   :  { %v900_v27 = vmul.f32 %v1645_v18, %v898_v26  ;;  %v1223_v18 = vld [vmem:[#allocation3 + $0x2] sm:$0x1] }
 0xda4   :  { %v1238_v25 = vrot.slane %v1223_v18, 7 }
 0xda5   :  { %902 = vrot.lane.b32.xlu1 %v900_v27, %s1847_s28  ;;  %v1222_v27 = vld [vmem:[#allocation3] sm:$0x1] }
 0xe17   :  { %v903_v28 = vpop.permute.xlu1 %902 }
 0xe18   :  { %906 = vst.msk [vmem:[#allocation3 + $0x8] sm:$0x3] %vm485_vm2, %v903_v28  ;;  %1508 = vmatmul.mubr.msk.f32.vlgmr.msra.gmra.mrb[6].mxu1 %vm98_vm1, %v903_v28  ;;  %v1241_v28 = vrot.slane %v1224_v21, 6 }
 0xe19   :  { %1588 = vmatpush3.bf16.msra.mxu1 %v1974_v16  ;;  %1529 = vmatprep.mubr.msk.f32.mxu1 %vm1843_vm0, %v1844_v1 }
 0xe1a   :  { %1589 = vmatprep.subr.bf16.mxu1 %v1842_v0 }
 0xe1d   :  { %1591 = vmatpush3.bf16.msra.mxu1 %v1981_v19 }
 0xeeb   :  { %v977_v30 = vpop.f32.mrb[6].mxu1 }
 0xeec   :  { %v981_v31 = vadd.f32 %v977_v30, %v908_v29  ;;  %v1509_v32 = vpop.f32.mrb[7].mxu1  ;;  %v1277_v29 = vrot.slane %v1262_v20, 7  ;;  %v1279_v30 = vrot.slane %v2079_v22, 6 }
 0xeed   :  { %v1244_v32 = vrot.slane %v2081_v23, 5 }
 0xeee   :  { %1648 = vtanh.f32 %v981_v31  ;;  %v1367_v34 = vmul.f32 -1.442695, %v981_v31  ;;  %v1226_v31 = vld [vmem:[#allocation3 + $0x8] sm:$0x1] }
 0xef0   :  { %1650 = vpow2.f32 %v1367_v34  ;;  %v1265_v34 = vld [vmem:[#allocation3 + $0x9] sm:$0x1] }
 0xef8   :  { %v1649_v33 = vpop.eup %1648 }
 0xef9   :  { %991 = vrot.lane.b32.xlu0 %v1649_v33, %s1846_s4  ;;  %v1261_v33 = vld [vmem:[#allocation3 + $0x1] sm:$0x1] }
 0xefa   :  { %v1651_v35 = vpop.eup %1650 }
 0xefb   :  { %v985_v36 = vadd.f32 1.0, %v1651_v35 }
 0xefd   :  { %1652 = vrcp.f32 %v985_v36 }
 0xf07   :  { %v1653_v16 = vpop.eup %1652 }
 0xf08   :  { %v989_v0 = vmul.f32 %v1653_v16, %v894_v24  ;;  %v2083_v24 = vld [vmem:[#allocation3 + $0x7] sm:$0x1] }
 0xf09   :  { %v1281_v35 = vrot.slane %v2083_v24, 5 }
 0xf6b   :  { %v992_v37 = vpop.permute.xlu0 %991 }
 0xf6c   :  { %v994_v1 = vmul.f32 %v1653_v16, %v992_v37 }
 0xf6e   :  { %996 = vrot.lane.b32.xlu1 %v994_v1, %s1847_s28 }
 0xfe0   :  { %v997_v19 = vpop.permute.xlu1 %996 }
 0xfe1   :  { %v999_v38 = vadd.f32 %v997_v19, %v989_v0 }
 0xfe3   :  { %1654 = vtanh.f32 %v999_v38 }
 0xfed   :  { %v1655_v39 = vpop.eup %1654 }
 0xfee   :  { %1002 = vrot.lane.b32.xlu0 %v1655_v39, %s1846_s4 }
0x1060   :  { %v1003_v40 = vpop.permute.xlu0 %1002 }
0x1061   :  { %v1005_v41 = vmul.f32 %v1653_v16, %v1003_v40 }
0x1063   :  { %1007 = vrot.lane.b32.xlu1 %v1005_v41, %s1847_s28 }
0x10d5   :  { %v1008_v42 = vpop.permute.xlu1 %1007 }
0x10d6   :  { %1011 = vst.msk [vmem:[#allocation3 + $0xa] sm:$0x3] %vm485_vm2, %v1008_v42  ;;  %1519 = vmatmul.mubr.msk.f32.vlgmr.msra.gmra.mrb[8].mxu0 %vm98_vm1, %v1008_v42 }
0x11a9   :  { %v1082_v44 = vpop.f32.mrb[8].mxu0 }
0x11aa   :  { %v1086_v45 = vadd.f32 %v1082_v44, %v1013_v43  ;;  %v1520_v46 = vpop.f32.mrb[9].mxu0 }
0x11ac   :  { %1656 = vtanh.f32 %v1086_v45  ;;  %v1369_v48 = vmul.f32 -1.442695, %v1086_v45 }
0x11ae   :  { %1658 = vpow2.f32 %v1369_v48 }
0x11b6   :  { %v1657_v47 = vpop.eup %1656 }
0x11b7   :  { %1096 = vrot.lane.b32.xlu0 %v1657_v47, %s1846_s4 }
0x11b8   :  { %v1659_v49 = vpop.eup %1658 }
0x11b9   :  { %v1090_v50 = vadd.f32 1.0, %v1659_v49 }
0x11bb   :  { %1660 = vrcp.f32 %v1090_v50 }
0x11c5   :  { %v1661_v51 = vpop.eup %1660 }
0x11c6   :  { %v1094_v54 = vmul.f32 %v1661_v51, %v999_v38 }
0x1229   :  { %v1097_v52 = vpop.permute.xlu0 %1096 }
0x122a   :  { %v1099_v53 = vmul.f32 %v1661_v51, %v1097_v52 }
0x122c   :  { %1101 = vrot.lane.b32.xlu1 %v1099_v53, %s1847_s28 }
0x129e   :  { %v1102_v55 = vpop.permute.xlu1 %1101 }
0x129f   :  { %v1104_v56 = vadd.f32 %v1102_v55, %v1094_v54 }
0x12a1   :  { %1662 = vtanh.f32 %v1104_v56 }
0x12ab   :  { %v1663_v57 = vpop.eup %1662 }
0x12ac   :  { %1107 = vrot.lane.b32.xlu0 %v1663_v57, %s1846_s4 }
0x131e   :  { %v1108_v58 = vpop.permute.xlu0 %1107 }
0x131f   :  { %v1110_v59 = vmul.f32 %v1661_v51, %v1108_v58 }
0x1321   :  { %1112 = vrot.lane.b32.xlu1 %v1110_v59, %s1847_s28 }
0x1393   :  { %v1113_v60 = vpop.permute.xlu1 %1112 }
0x1394   :  { %1116 = vst.msk [vmem:[#allocation3 + $0xc] sm:$0x3] %vm485_vm2, %v1113_v60  ;;  %1530 = vmatmul.mubr.msk.f32.vlgmr.msra.gmra.mrb[8].mxu1 %vm98_vm1, %v1113_v60 }
0x1467   :  { %v1187_v62 = vpop.f32.mrb[8].mxu1 }
0x1468   :  { %v1191_v63 = vadd.f32 %v1187_v62, %v1118_v61  ;;  %v1531_v2 = vpop.f32.mrb[9].mxu1 }
0x146a   :  { %1664 = vtanh.f32 %v1191_v63  ;;  %v1371_v4 = vmul.f32 -1.442695, %v1191_v63 }
0x146c   :  { %1666 = vpow2.f32 %v1371_v4 }
0x1474   :  { %v1665_v3 = vpop.eup %1664 }
0x1475   :  { %1201 = vrot.lane.b32.xlu0 %v1665_v3, %s1846_s4 }
0x1476   :  { %v1667_v5 = vpop.eup %1666 }
0x1477   :  { %v1195_v6 = vadd.f32 1.0, %v1667_v5 }
0x1479   :  { %1668 = vrcp.f32 %v1195_v6 }
0x1483   :  { %v1669_v7 = vpop.eup %1668 }
0x1484   :  { %v1199_v10 = vmul.f32 %v1669_v7, %v1104_v56 }
0x14e7   :  { %v1202_v8 = vpop.permute.xlu0 %1201 }
0x14e8   :  { %v1204_v9 = vmul.f32 %v1669_v7, %v1202_v8 }
0x14ea   :  { %1206 = vrot.lane.b32.xlu1 %v1204_v9, %s1847_s28 }
0x155c   :  { %v1207_v11 = vpop.permute.xlu1 %1206 }
0x155d   :  { %v1209_v12 = vadd.f32 %v1207_v11, %v1199_v10 }
0x155f   :  { %1670 = vtanh.f32 %v1209_v12 }
0x1569   :  { %v1671_v13 = vpop.eup %1670 }
0x156a   :  { %1212 = vrot.lane.b32.xlu0 %v1671_v13, %s1846_s4 }
0x156e   :  { %1296 = vrot.lane.b32.xlu0 %v1209_v12, %s1848_s29 }
0x15dc   :  { %v1213_v14 = vpop.permute.xlu0 %1212 }
0x15dd   :  { %v1215_v15 = vmul.f32 %v1669_v7, %v1213_v14 }
0x15df   :  { %1217 = vrot.lane.b32.xlu1 %v1215_v15, %s1847_s28 }
0x15e0   :  { %v1297_v17 = vpop.permute.xlu0 %1296 }
0x15e1   :  { %1299 = vst.msk [vmem:[#allocation15] sm:$0x3] %vm485_vm2, %v1297_v17 }
0x1651   :  { %v1218_v26 = vpop.permute.xlu1 %1217 }
0x1652   :  { %1221 = vst.msk [vmem:[#allocation3 + $0xe] sm:$0x3] %vm485_vm2, %v1218_v26  ;;  %1294 = vst.msk [vmem:[#allocation13] sm:$0x3] %vm485_vm2, %v1218_v26 }
0x1653   :  { %1771 = shalt.err (!%p1768_p8)
}
0x1654   :  { %s1772_s16 = scalar_lea.hbm %s2159_s6, 32 }
0x1655   :  { %p1773_p9 = scmp.ne.s32.totalorder %s2159_s6, %s1772_s16  ;;  %p1776_p10 = scmp.lt.u32.totalorder %s1772_s16, %s2159_s6 }
0x1657   :  { %p1778_p11 = pnand %p1776_p10, %p1773_p9 }
0x1659   :  { %1781 = shalt.err (!%p1778_p11)
}
0x165a   :  { %1321 = dma.vmem_to_hbm [thread:$0]  %s2085_s8, 32, %s2159_s6, [#allocation14]   ;;  %v1227_v36 = vld [vmem:[#allocation3 + $0xa] sm:$0x1]  ;;  %v1266_v16 = vld [vmem:[#allocation3 + $0xb] sm:$0x1]  ;;  %v1240_v1 = vsel %vm1239_vm3, %v1238_v25, %v1222_v27 }
0x165b   :  { %v1228_v37 = vld [vmem:[#allocation3 + $0xc] sm:$0x1]  ;;  %v1267_v0 = vld [vmem:[#allocation3 + $0xd] sm:$0x1]  ;;  %s1782_s21 = scalar_lea.vmem %s2088_s10, 32  ;;  %p1787_p13 = scmp.lt.s32.totalorder %s2088_s10, %s2088_s10 }
0x165c   :  { %p1783_p12 = scmp.ne.s32.totalorder %s2088_s10, %s1782_s21  ;;  %p1788_p0 = scmp.lt.s32.totalorder %s1782_s21, %s1782_s21 }
0x165e   :  { %p1789_p1 = por %p1788_p0, %p1787_p13 }
0x1660   :  { %p1790_p2 = pnand %p1789_p1, %p1783_p12 }
0x1662   :  { %1793 = shalt.err (!%p1790_p2)
}
0x1663   :  { %s1794_s24 = scalar_lea.hbm %s2160_s7, 32 }
0x1664   :  { %p1795_p3 = scmp.ne.s32.totalorder %s2160_s7, %s1794_s24  ;;  %p1798_p4 = scmp.lt.u32.totalorder %s1794_s24, %s2160_s7 }
0x1666   :  { %p1800_p5 = pnand %p1798_p4, %p1795_p3 }
0x1668   :  { %1803 = shalt.err (!%p1800_p5)
}
0x1669   :  { %1331 = dma.vmem_to_hbm [thread:$0]  %s2088_s10, 32, %s2160_s7, [#allocation14]   ;;  %vm1245_vm5 = vcmask 1043459   ;;  %v1247_v19 = vrot.slane %v1226_v31, 4  ;;  %v1278_v38 = vsel %vm1239_vm3, %v1277_v29, %v1261_v33  ;;  %v1283_v39 = vrot.slane %v1265_v34, 4 }
0x166a   :  { %v1243_v40 = vsel %vm1242_vm4, %v1241_v28, %v1240_v1  ;;  %vm1248_vm6 = vcmask 1044484   ;;  %v1250_v41 = vrot.slane %v1227_v36, 3  ;;  %v1285_v42 = vrot.slane %v1266_v16, 3  ;;  %s1851_s4 = smov [#allocation12]   ;;  %v1229_v48 = vld [vmem:[#allocation3 + $0xe] sm:$0x1] }
0x166b   :  { %vm1251_vm7 = vcmask 1045509   ;;  %v1253_v43 = vrot.slane %v1228_v37, 2  ;;  %v1280_v44 = vsel %vm1242_vm4, %v1279_v30, %v1278_v38  ;;  %v1287_v45 = vrot.slane %v1267_v0, 2  ;;  %s1305_s7 = sshll.u32 %s1851_s4, 4  ;;  %v1268_v50 = vld [vmem:[#allocation3 + $0xf] sm:$0x1]  ;;  %s1306_s7 = int_to_ptr.vmem [resolvable:$true] %s1305_s7 }
0x166c   :  { %v1246_v46 = vsel %vm1245_vm5, %v1244_v32, %v1243_v40  ;;  %vm1254_vm8 = vcmask 1046534   ;;  %v1282_v47 = vsel %vm1245_vm5, %v1281_v35, %v1280_v44  ;;  %vm1257_vm9 = vcmask 1047559   ;;  %s1804_s28 = scalar_lea.vmem %s1306_s7, 256  ;;  %p1809_p7 = scmp.lt.s32.totalorder %s1306_s7, %s1306_s7 }
0x166d   :  { %v1249_v49 = vsel %vm1248_vm6, %v1247_v19, %v1246_v46  ;;  %v1284_v51 = vsel %vm1248_vm6, %v1283_v39, %v1282_v47  ;;  %v1256_v53 = vrot.slane %v1229_v48, 1  ;;  %v1289_v55 = vrot.slane %v1268_v50, 1  ;;  %p1805_p6 = scmp.ne.s32.totalorder %s1306_s7, %s1804_s28  ;;  %p1810_p8 = scmp.lt.s32.totalorder %s1804_s28, %s1804_s28 }
0x166e   :  { %v1252_v52 = vsel %vm1251_vm7, %v1250_v41, %v1249_v49  ;;  %v1286_v54 = vsel %vm1251_vm7, %v1285_v42, %v1284_v51 }
0x166f   :  { %v1255_v56 = vsel %vm1254_vm8, %v1253_v43, %v1252_v52  ;;  %v1288_v57 = vsel %vm1254_vm8, %v1287_v45, %v1286_v54  ;;  %p1811_p9 = por %p1810_p8, %p1809_p7 }
0x1670   :  { %v1258_v58 = vsel %vm1257_vm9, %v1256_v53, %v1255_v56  ;;  %v1290_v59 = vsel %vm1257_vm9, %v1289_v55, %v1288_v57 }
0x1671   :  { %1260 = vst.msk [vmem:[#allocation12] sm:$0xff] %vm98_vm1, %v1258_v58  ;;  %1293 = vst.msk [vmem:[#allocation12 + $0x8] sm:$0xff] %vm98_vm1, %v1290_v59  ;;  %p1812_p10 = pnand %p1811_p9, %p1805_p6 }
0x1673   :  { %1815 = shalt.err (!%p1812_p10)
}
0x1674   :  { %s1816_s8 = scalar_lea.hbm %s2158_s5, 256 }
0x1675   :  { %p1817_p11 = scmp.ne.s32.totalorder %s2158_s5, %s1816_s8  ;;  %p1820_p12 = scmp.lt.u32.totalorder %s1816_s8, %s2158_s5 }
0x1677   :  { %p1822_p13 = pnand %p1820_p12, %p1817_p11 }
0x1679   :  { %1825 = shalt.err (!%p1822_p13)
}
0x167a   :  { %1311 = dma.vmem_to_hbm [thread:$0]  %s1306_s7, 256, %s2158_s5, [#allocation6], %s1838_s13, %s1838_s13, %s1839_s14  }
0x167b   :  { %1832 = dma.done.wait [#allocation6], 256  }
0x167c   :  { %1833 = vsyncadd [#allocation6], 4294967040 }
0x167d   :  { %1834 = dma.done.wait [#allocation14], 64  }
0x167e   :  { %1835 = vsyncadd [#allocation14], 4294967232 }
0x167f   :  { %1341 = vsyncpa [#allocation5], 1 }
0x1680   :  { %1342 = vsyncpa [#allocation8], 1 }
0x1681   :  { %1343 = vsyncpa [#allocation11], 1 }
0x1682   :  { %1344 = vsyncpa [#allocation6], 1 }
0x1683   :  { %1345 = vsyncpa [#allocation14], 1 }

</bundles_post_ra>
